<compile_context>
chip_gen: v7x
topology: tpu7x:2x2x1
jax: 0.10.0
libtpu: 0.0.40
codegen_flags: <defaults>
</compile_context>

<pallas_src>
import functools

import numpy as np
import jax
import jax.numpy as jnp
from jax.experimental import pallas as pl
from jax.experimental.pallas import tpu as pltpu

LEAKY_SLOPE = 0.01
BN_EPS = 1e-5


# ------------------------------ fused kernel -------------------------------

def _rrr_kernel(x_ref, wsc_ref, wc1_ref, wc2_ref, wr1_ref, wr2_ref,
                rsel_ref, csel_ref, scale_ref, shift_ref, o_ref,
                bufA, bufB, p0, p1, p2, *, H, W, C):
    """One image (one grid step) of the RRR_block forward, lane-dense.

    x_ref   : (H, W*C)        lane-dense input rows of this image
    wsc_ref : (W*C, W*C)      bf16 block-diagonal 1x1 shortcut weight
    wc*_ref : (3, W*C, W*C)   bf16 block-tridiagonal 3x3 tap matrices (full res)
    wr*_ref : (3, Wo*C, Wo*C) bf16 tap matrices (pooled res)
    rsel_ref: (3, Ho, H)      f32 maxpool row-selection matrices
    csel_ref: (3, W*C, Wo*C)  f32 maxpool column/lane-selection matrices
    scale/shift: (5, W*C)     folded BN scale/shift, lane-tiled
                              (rows: 0=shortcut, 1=conv1, 2=conv2, 3=rec1, 4=rec2)
    o_ref   : (Ho, Wo*C)      pooled lane-dense output rows of this image
    bufA/bufB : (H+2, W*C)    padded full-res working buffers
    p0/p1/p2  : (Ho+2, Wo*C)  padded pooled working buffers
    """
    f32 = jnp.float32
    bf16 = jnp.bfloat16
    Ho, Wo = H // 2, W // 2
    WC, WoC = W * C, Wo * C

    # Zero only the 1-row halos (interiors are fully overwritten every step;
    # no full-buffer fills, no cross-grid-step dependencies -> safe with the
    # "parallel" grid on v7x).
    zf = jnp.zeros((1, WC), f32)
    zh = jnp.zeros((1, WoC), f32)
    bufA[0:1, :] = zf
    bufA[H + 1:H + 2, :] = zf
    bufB[0:1, :] = zf
    bufB[H + 1:H + 2, :] = zf
    p0[0:1, :] = zh
    p0[Ho + 1:Ho + 2, :] = zh
    p1[0:1, :] = zh
    p1[Ho + 1:Ho + 2, :] = zh
    p2[0:1, :] = zh
    p2[Ho + 1:Ho + 2, :] = zh

    def conv3x3(src, w_ref, scale_row, shift_row, rows, act):
        # src: padded (rows+2, nl) buffer.  ky taps are row offsets, the kx
        # taps + channel mixing are folded into block-tridiagonal lane
        # weights -> 3 MXU matmuls with K = nl, f32 accumulation.
        y = jnp.dot(src[0:rows, :].astype(bf16), w_ref[0],
                    preferred_element_type=f32)
        y += jnp.dot(src[1:rows + 1, :].astype(bf16), w_ref[1],
                     preferred_element_type=f32)
        y += jnp.dot(src[2:rows + 2, :].astype(bf16), w_ref[2],
                     preferred_element_type=f32)
        y = y * scale_row + shift_row                     # folded BN (+ bias)
        if act == "relu":
            y = jnp.maximum(y, 0.0)
        elif act == "lrelu":
            y = jnp.where(y > 0, y, LEAKY_SLOPE * y)
        return y

    # ------------------------------ ResBlock --------------------------------
    x0 = x_ref[...]                                       # (H, WC) f32
    bufA[1:H + 1, :] = x0

    # 1x1 shortcut conv + BN: single matmul with a block-diagonal lane weight.
    identity = jnp.dot(x0.astype(bf16), wsc_ref[...], preferred_element_type=f32)
    identity = identity * scale_ref[0:1, :] + shift_ref[0:1, :]

    y = conv3x3(bufA, wc1_ref, scale_ref[1:2, :], shift_ref[1:2, :], H, "lrelu")
    bufB[1:H + 1, :] = y
    y = conv3x3(bufB, wc2_ref, scale_ref[2:3, :], shift_ref[2:3, :], H, "none")
    z = y + identity                                      # fused residual add
    z = jnp.where(z > 0, z, LEAKY_SLOPE * z)              # fused LeakyReLU

    # MaxPool2d(kernel=3, stride=2, padding=1), fully vectorized & separable:
    # row direction via 3 row-selection matmuls + max, column direction via
    # 3 lane-selection matmuls + max.  Boundary windows duplicate the edge
    # row/column (no-op under max) so no -inf padding is needed.
    rm = jnp.maximum(
        jnp.maximum(jnp.dot(rsel_ref[0], z, preferred_element_type=f32),
                    jnp.dot(rsel_ref[1], z, preferred_element_type=f32)),
        jnp.dot(rsel_ref[2], z, preferred_element_type=f32))       # (Ho, WC)
    pool = jnp.maximum(
        jnp.maximum(jnp.dot(rm, csel_ref[0], preferred_element_type=f32),
                    jnp.dot(rm, csel_ref[1], preferred_element_type=f32)),
        jnp.dot(rm, csel_ref[2], preferred_element_type=f32))      # (Ho, WoC)

    p0[1:Ho + 1, :] = pool                                # x = ResBlock output

    # ----------------- RCNN: two Recurrent_blocks (t = 2) -------------------
    sc3, sh3 = scale_ref[3:4, 0:WoC], shift_ref[3:4, 0:WoC]
    sc4, sh4 = scale_ref[4:5, 0:WoC], shift_ref[4:5, 0:WoC]

    def recurrent(xin_buf, w_ref, sc, sh):
        # x1 = conv(x); x1 = conv(x + x1); x1 = conv(x + x1)
        y = conv3x3(xin_buf, w_ref, sc, sh, Ho, "relu")
        p1[1:Ho + 1, :] = xin_buf[1:Ho + 1, :] + y
        y = conv3x3(p1, w_ref, sc, sh, Ho, "relu")
        p1[1:Ho + 1, :] = xin_buf[1:Ho + 1, :] + y
        y = conv3x3(p1, w_ref, sc, sh, Ho, "relu")
        return y

    r = recurrent(p0, wr1_ref, sc3, sh3)
    p2[1:Ho + 1, :] = r
    r = recurrent(p2, wr2_ref, sc4, sh4)

    o_ref[...] = p0[1:Ho + 1, :] + r                      # fused final residual


# -------------------------------- wrapper -----------------------------------

def rrr_block_forward(x_nchw, params):
    """x_nchw: (N, Cin, H, W) float32. Returns (N, ch_out, H//2, W//2) NCHW."""
    N, Cin, H, W = x_nchw.shape
    C = params["scale"].shape[1] // W                     # ch_out
    assert H % 2 == 0 and W % 2 == 0 and Cin <= C
    Ho, Wo = H // 2, W // 2
    WC, WoC = W * C, Wo * C

    # NCHW -> NHWC, zero-pad channels to C, fold W into the lane axis.
    x = jnp.transpose(x_nchw, (0, 2, 3, 1)).astype(jnp.float32)
    x = jnp.pad(x, ((0, 0), (0, 0), (0, 0), (0, C - Cin)))
    x2d = x.reshape(N * H, WC)                            # lane-dense rows

    out2d = pl.pallas_call(
        functools.partial(_rrr_kernel, H=H, W=W, C=C),
        grid=(N,),
        out_shape=jax.ShapeDtypeStruct((N * Ho, WoC), jnp.float32),
        in_specs=[
            pl.BlockSpec((H, WC), lambda n: (n, 0)),           # x (per image)
            pl.BlockSpec((WC, WC), lambda n: (0, 0)),          # w_sc
            pl.BlockSpec((3, WC, WC), lambda n: (0, 0, 0)),    # w_c1
            pl.BlockSpec((3, WC, WC), lambda n: (0, 0, 0)),    # w_c2
            pl.BlockSpec((3, WoC, WoC), lambda n: (0, 0, 0)),  # w_r1
            pl.BlockSpec((3, WoC, WoC), lambda n: (0, 0, 0)),  # w_r2
            pl.BlockSpec((3, Ho, H), lambda n: (0, 0, 0)),     # rsel
            pl.BlockSpec((3, WC, WoC), lambda n: (0, 0, 0)),   # csel
            pl.BlockSpec((5, WC), lambda n: (0, 0)),           # scale
            pl.BlockSpec((5, WC), lambda n: (0, 0)),           # shift
        ],
        out_specs=pl.BlockSpec((Ho, WoC), lambda n: (n, 0)),
        scratch_shapes=[
            pltpu.VMEM((H + 2, WC), jnp.float32),              # bufA
            pltpu.VMEM((H + 2, WC), jnp.float32),              # bufB
            pltpu.VMEM((Ho + 2, WoC), jnp.float32),            # p0 (pooled x)
            pltpu.VMEM((Ho + 2, WoC), jnp.float32),            # p1
            pltpu.VMEM((Ho + 2, WoC), jnp.float32),            # p2
        ],
        compiler_params=pltpu.CompilerParams(
            dimension_semantics=("parallel",),                 # v7x: both TCs
            vmem_limit_bytes=32 * 1024 * 1024),
    )(x2d, params["w_sc"], params["w_c1"], params["w_c2"],
      params["w_r1"], params["w_r2"], params["rsel"], params["csel"],
      params["scale"], params["shift"])

    y = out2d.reshape(N, Ho, Wo, C)
    return jnp.transpose(y, (0, 3, 1, 2))                 # NHWC -> NCHW


# ------------------------------- parameters ---------------------------------

def _bn_fold(gamma, beta, rmean, rvar, conv_bias):
    scale = gamma / jnp.sqrt(rvar + BN_EPS)
    shift = scale * (conv_bias - rmean) + beta
    return scale, shift


def init_params(key, ch_in, ch_out, H, W):
    """Random PyTorch-layout parameters, pre-packed into the lane-dense kernel
    layout: block-(tri)diagonal (W*C, W*C) weights in bf16, maxpool selection
    matrices, BN + conv bias folded into lane-tiled scale/shift."""
    C = ch_out
    Ho, Wo = H // 2, W // 2
    keys = iter(jax.random.split(key, 40))

    def conv_unit(cin, cout, k):
        w = 0.1 * jax.random.normal(next(keys), (cout, cin, k, k), jnp.float32)
        b = 0.1 * jax.random.normal(next(keys), (cout,), jnp.float32)
        gamma = 1.0 + 0.1 * jax.random.normal(next(keys), (cout,), jnp.float32)
        beta = 0.1 * jax.random.normal(next(keys), (cout,), jnp.float32)
        rmean = 0.1 * jax.random.normal(next(keys), (cout,), jnp.float32)
        rvar = jax.random.uniform(next(keys), (cout,), jnp.float32,
                                  minval=0.5, maxval=1.5)
        scale, shift = _bn_fold(gamma, beta, rmean, rvar, b)
        return np.asarray(w), np.asarray(scale), np.asarray(shift)

    def pack3x3_lane(w, Wd):
        # (cout, cin, 3, 3) -> (3, Wd*C, Wd*C) block-tridiagonal tap matrices:
        # M[ky, xi*C+ci, xo*C+co] = w[co, ci, ky, xi - xo + 1]
        cout, cin = w.shape[0], w.shape[1]
        M = np.zeros((3, Wd * C, Wd * C), np.float32)
        for ky in range(3):
            for xo in range(Wd):
                for kx in range(3):
                    xi = xo + kx - 1
                    if 0 <= xi < Wd:
                        M[ky, xi * C:xi * C + cin, xo * C:xo * C + cout] = \
                            w[:, :, ky, kx].T
        return jnp.asarray(M, jnp.bfloat16)

    def pack1x1_lane(w, Wd):
        cout, cin = w.shape[0], w.shape[1]
        blk = w.reshape(cout, cin).T
        M = np.zeros((Wd * C, Wd * C), np.float32)
        for x in range(Wd):
            M[x * C:x * C + cin, x * C:x * C + cout] = blk
        return jnp.asarray(M, jnp.bfloat16)

    w_sc, sc_s, sc_b = conv_unit(ch_in, ch_out, 1)   # ResBlock.shortcut conv+bn
    w_c1, c1_s, c1_b = conv_unit(ch_in, ch_out, 3)   # ResBlock.conv1 + bn1
    w_c2, c2_s, c2_b = conv_unit(ch_out, ch_out, 3)  # ResBlock.conv2 + bn2
    w_r1, r1_s, r1_b = conv_unit(ch_out, ch_out, 3)  # Recurrent_block #1
    w_r2, r2_s, r2_b = conv_unit(ch_out, ch_out, 3)  # Recurrent_block #2

    # MaxPool(k=3, s=2, p=1) selection matrices.  Boundary windows duplicate
    # the edge row/column, which is a no-op under max (replaces -inf padding).
    rsel = np.zeros((3, Ho, H), np.float32)
    for k in range(3):
        for yo in range(Ho):
            y = min(max(2 * yo + k - 1, 0), H - 1)
            rsel[k, yo, y] = 1.0
    csel = np.zeros((3, W * C, Wo * C), np.float32)
    for k in range(3):
        for xo in range(Wo):
            xi = min(max(2 * xo + k - 1, 0), W - 1)
            for c in range(C):
                csel[k, xi * C + c, xo * C + c] = 1.0

    scale = np.stack([np.tile(s, W) for s in (sc_s, c1_s, c2_s, r1_s, r2_s)], 0)
    shift = np.stack([np.tile(s, W) for s in (sc_b, c1_b, c2_b, r1_b, r2_b)], 0)

    return {
        "w_sc": pack1x1_lane(w_sc, W),               # (WC, WC)     bf16
        "w_c1": pack3x3_lane(w_c1, W),               # (3, WC, WC)  bf16
        "w_c2": pack3x3_lane(w_c2, W),
        "w_r1": pack3x3_lane(w_r1, Wo),              # (3, WoC, WoC) bf16
        "w_r2": pack3x3_lane(w_r2, Wo),
        "rsel": jnp.asarray(rsel),                   # (3, Ho, H)    f32
        "csel": jnp.asarray(csel),                   # (3, WC, WoC)  f32
        "scale": jnp.asarray(scale),                 # (5, WC)       f32
        "shift": jnp.asarray(shift),                 # (5, WC)       f32
    }


# ---------------------------------- main -------------------------------------

if __name__ == "__main__":
    key = jax.random.PRNGKey(0)
    kx, kp = jax.random.split(key)
    N, Cin, H, W = 2, 4, 16, 16
    x = jax.random.normal(kx, (N, Cin, H, W), jnp.float32)   # NCHW
    params = init_params(kp, ch_in=Cin, ch_out=8, H=H, W=W)

    fwd = jax.jit(rrr_block_forward)
    y = fwd(x, params)
    jax.block_until_ready(y)
    assert y.shape == (2, 8, 8, 8), y.shape
    assert bool(jnp.all(jnp.isfinite(y))), "non-finite output"
    print("KERNEL_OK")
</pallas_src>

<mosaic_0001>
module attributes {stable_mosaic.version = 11 : i64} {
  func.func @_rrr_kernel(%arg0: i32, %arg1: memref<16x128xf32, #tpu.memory_space<vmem>>, %arg2: memref<128x128xbf16, #tpu.memory_space<vmem>>, %arg3: memref<3x128x128xbf16, #tpu.memory_space<vmem>>, %arg4: memref<3x128x128xbf16, #tpu.memory_space<vmem>>, %arg5: memref<3x64x64xbf16, #tpu.memory_space<vmem>>, %arg6: memref<3x64x64xbf16, #tpu.memory_space<vmem>>, %arg7: memref<3x8x16xf32, #tpu.memory_space<vmem>>, %arg8: memref<3x128x64xf32, #tpu.memory_space<vmem>>, %arg9: memref<5x128xf32, #tpu.memory_space<vmem>>, %arg10: memref<5x128xf32, #tpu.memory_space<vmem>>, %arg11: memref<8x64xf32, #tpu.memory_space<vmem>>, %arg12: memref<18x128xf32, #tpu.memory_space<vmem>>, %arg13: memref<18x128xf32, #tpu.memory_space<vmem>>, %arg14: memref<10x64xf32, #tpu.memory_space<vmem>>, %arg15: memref<10x64xf32, #tpu.memory_space<vmem>>, %arg16: memref<10x64xf32, #tpu.memory_space<vmem>>) attributes {dimension_semantics = [#tpu.dimension_semantics<parallel>], iteration_bounds = array<i64: 2>, scalar_prefetch = 0 : i64, scratch_operands = 5 : i64, tpu.core_type = #tpu.core_type<tc>, window_params = [{transform_indices = @transform_0, window_bounds = array<i64: 16, 128>}, {pipeline_mode = #tpu.pipeline_mode<synchronous>, transform_indices = @transform_1, window_bounds = array<i64: 128, 128>}, {pipeline_mode = #tpu.pipeline_mode<synchronous>, transform_indices = @transform_2, window_bounds = array<i64: 3, 128, 128>}, {pipeline_mode = #tpu.pipeline_mode<synchronous>, transform_indices = @transform_3, window_bounds = array<i64: 3, 128, 128>}, {pipeline_mode = #tpu.pipeline_mode<synchronous>, transform_indices = @transform_4, window_bounds = array<i64: 3, 64, 64>}, {pipeline_mode = #tpu.pipeline_mode<synchronous>, transform_indices = @transform_5, window_bounds = array<i64: 3, 64, 64>}, {pipeline_mode = #tpu.pipeline_mode<synchronous>, transform_indices = @transform_6, window_bounds = array<i64: 3, 8, 16>}, {pipeline_mode = #tpu.pipeline_mode<synchronous>, transform_indices = @transform_7, window_bounds = array<i64: 3, 128, 64>}, {pipeline_mode = #tpu.pipeline_mode<synchronous>, transform_indices = @transform_8, window_bounds = array<i64: 5, 128>}, {pipeline_mode = #tpu.pipeline_mode<synchronous>, transform_indices = @transform_9, window_bounds = array<i64: 5, 128>}, {transform_indices = @transform_10, window_bounds = array<i64: 8, 64>}]} {
    %cst = arith.constant 0.000000e+00 : f32
    %0 = vector.broadcast %cst : f32 to vector<1x128xf32>
    %cst_0 = arith.constant 0.000000e+00 : f32
    %1 = vector.broadcast %cst_0 : f32 to vector<1x64xf32>
    %c0 = arith.constant 0 : index
    %c0_1 = arith.constant 0 : index
    %2 = vector.load %arg12[%c0, %c0_1] : memref<18x128xf32, #tpu.memory_space<vmem>>, vector<1x128xf32>
    tpu.vector_store %arg12[%c0, %c0_1], %0 {strides = array<i32>} : memref<18x128xf32, #tpu.memory_space<vmem>>, vector<1x128xf32>,
    %c17 = arith.constant 17 : index
    %c0_2 = arith.constant 0 : index
    %3 = vector.load %arg12[%c17, %c0_2] : memref<18x128xf32, #tpu.memory_space<vmem>>, vector<1x128xf32>
    tpu.vector_store %arg12[%c17, %c0_2], %0 {strides = array<i32>} : memref<18x128xf32, #tpu.memory_space<vmem>>, vector<1x128xf32>,
    %c0_3 = arith.constant 0 : index
    %c0_4 = arith.constant 0 : index
    %4 = vector.load %arg13[%c0_3, %c0_4] : memref<18x128xf32, #tpu.memory_space<vmem>>, vector<1x128xf32>
    tpu.vector_store %arg13[%c0_3, %c0_4], %0 {strides = array<i32>} : memref<18x128xf32, #tpu.memory_space<vmem>>, vector<1x128xf32>,
    %c17_5 = arith.constant 17 : index
    %c0_6 = arith.constant 0 : index
    %5 = vector.load %arg13[%c17_5, %c0_6] : memref<18x128xf32, #tpu.memory_space<vmem>>, vector<1x128xf32>
    tpu.vector_store %arg13[%c17_5, %c0_6], %0 {strides = array<i32>} : memref<18x128xf32, #tpu.memory_space<vmem>>, vector<1x128xf32>,
    %c0_7 = arith.constant 0 : index
    %c0_8 = arith.constant 0 : index
    %6 = vector.load %arg14[%c0_7, %c0_8] : memref<10x64xf32, #tpu.memory_space<vmem>>, vector<1x64xf32>
    tpu.vector_store %arg14[%c0_7, %c0_8], %1 {strides = array<i32>} : memref<10x64xf32, #tpu.memory_space<vmem>>, vector<1x64xf32>,
    %c9 = arith.constant 9 : index
    %c0_9 = arith.constant 0 : index
    %7 = vector.load %arg14[%c9, %c0_9] : memref<10x64xf32, #tpu.memory_space<vmem>>, vector<1x64xf32>
    tpu.vector_store %arg14[%c9, %c0_9], %1 {strides = array<i32>} : memref<10x64xf32, #tpu.memory_space<vmem>>, vector<1x64xf32>,
    %c0_10 = arith.constant 0 : index
    %c0_11 = arith.constant 0 : index
    %8 = vector.load %arg15[%c0_10, %c0_11] : memref<10x64xf32, #tpu.memory_space<vmem>>, vector<1x64xf32>
    tpu.vector_store %arg15[%c0_10, %c0_11], %1 {strides = array<i32>} : memref<10x64xf32, #tpu.memory_space<vmem>>, vector<1x64xf32>,
    %c9_12 = arith.constant 9 : index
    %c0_13 = arith.constant 0 : index
    %9 = vector.load %arg15[%c9_12, %c0_13] : memref<10x64xf32, #tpu.memory_space<vmem>>, vector<1x64xf32>
    tpu.vector_store %arg15[%c9_12, %c0_13], %1 {strides = array<i32>} : memref<10x64xf32, #tpu.memory_space<vmem>>, vector<1x64xf32>,
    %c0_14 = arith.constant 0 : index
    %c0_15 = arith.constant 0 : index
    %10 = vector.load %arg16[%c0_14, %c0_15] : memref<10x64xf32, #tpu.memory_space<vmem>>, vector<1x64xf32>
    tpu.vector_store %arg16[%c0_14, %c0_15], %1 {strides = array<i32>} : memref<10x64xf32, #tpu.memory_space<vmem>>, vector<1x64xf32>,
    %c9_16 = arith.constant 9 : index
    %c0_17 = arith.constant 0 : index
    %11 = vector.load %arg16[%c9_16, %c0_17] : memref<10x64xf32, #tpu.memory_space<vmem>>, vector<1x64xf32>
    tpu.vector_store %arg16[%c9_16, %c0_17], %1 {strides = array<i32>} : memref<10x64xf32, #tpu.memory_space<vmem>>, vector<1x64xf32>,
    %c0_18 = arith.constant 0 : index
    %c0_19 = arith.constant 0 : index
    %12 = vector.load %arg1[%c0_18, %c0_19] : memref<16x128xf32, #tpu.memory_space<vmem>>, vector<16x128xf32>
    %c1 = arith.constant 1 : index
    %c0_20 = arith.constant 0 : index
    %13 = vector.load %arg12[%c1, %c0_20] : memref<18x128xf32, #tpu.memory_space<vmem>>, vector<16x128xf32>
    tpu.vector_store %arg12[%c1, %c0_20], %12 {strides = array<i32>} : memref<18x128xf32, #tpu.memory_space<vmem>>, vector<16x128xf32>,
    %14 = arith.truncf %12 : vector<16x128xf32> to vector<16x128xbf16>
    %c0_21 = arith.constant 0 : index
    %c0_22 = arith.constant 0 : index
    %15 = vector.load %arg2[%c0_21, %c0_22] : memref<128x128xbf16, #tpu.memory_space<vmem>>, vector<128x128xbf16>
    %cst_23 = arith.constant dense<0.000000e+00> : vector<16x128xf32>
    %16 = tpu.matmul %14, %15, %cst_23 {dimension_numbers = #tpu.dot_dimension_numbers<[1], [0], [0], [1], [0, 0, 1, 1], [], []>} : vector<16x128xbf16>, vector<128x128xbf16>, vector<16x128xf32> -> vector<16x128xf32>
    %c0_24 = arith.constant 0 : index
    %c0_25 = arith.constant 0 : index
    %17 = vector.load %arg9[%c0_24, %c0_25] : memref<5x128xf32, #tpu.memory_space<vmem>>, vector<1x128xf32>
    %18 = vector.broadcast %17 : vector<1x128xf32> to vector<16x128xf32>
    %19 = arith.mulf %16, %18 : vector<16x128xf32>
    %c0_26 = arith.constant 0 : index
    %c0_27 = arith.constant 0 : index
    %20 = vector.load %arg10[%c0_26, %c0_27] : memref<5x128xf32, #tpu.memory_space<vmem>>, vector<1x128xf32>
    %21 = vector.broadcast %20 : vector<1x128xf32> to vector<16x128xf32>
    %22 = arith.addf %19, %21 : vector<16x128xf32>
    %c1_28 = arith.constant 1 : index
    %c0_29 = arith.constant 0 : index
    %23 = vector.load %arg9[%c1_28, %c0_29] : memref<5x128xf32, #tpu.memory_space<vmem>>, vector<1x128xf32>
    %c1_30 = arith.constant 1 : index
    %c0_31 = arith.constant 0 : index
    %24 = vector.load %arg10[%c1_30, %c0_31] : memref<5x128xf32, #tpu.memory_space<vmem>>, vector<1x128xf32>
    %c0_32 = arith.constant 0 : index
    %c0_33 = arith.constant 0 : index
    %25 = vector.load %arg12[%c0_32, %c0_33] : memref<18x128xf32, #tpu.memory_space<vmem>>, vector<16x128xf32>
    %26 = arith.truncf %25 : vector<16x128xf32> to vector<16x128xbf16>
    %c0_34 = arith.constant 0 : index
    %c0_35 = arith.constant 0 : index
    %c0_36 = arith.constant 0 : index
    %27 = vector.load %arg3[%c0_34, %c0_35, %c0_36] : memref<3x128x128xbf16, #tpu.memory_space<vmem>>, vector<1x128x128xbf16>
    %28 = vector.shape_cast %27 : vector<1x128x128xbf16> to vector<128x128xbf16>
    %cst_37 = arith.constant dense<0.000000e+00> : vector<16x128xf32>
    %29 = tpu.matmul %26, %28, %cst_37 {dimension_numbers = #tpu.dot_dimension_numbers<[1], [0], [0], [1], [0, 0, 1, 1], [], []>} : vector<16x128xbf16>, vector<128x128xbf16>, vector<16x128xf32> -> vector<16x128xf32>
    %c1_38 = arith.constant 1 : index
    %c0_39 = arith.constant 0 : index
    %30 = vector.load %arg12[%c1_38, %c0_39] : memref<18x128xf32, #tpu.memory_space<vmem>>, vector<16x128xf32>
    %31 = arith.truncf %30 : vector<16x128xf32> to vector<16x128xbf16>
    %c1_40 = arith.constant 1 : index
    %c0_41 = arith.constant 0 : index
    %c0_42 = arith.constant 0 : index
    %32 = vector.load %arg3[%c1_40, %c0_41, %c0_42] : memref<3x128x128xbf16, #tpu.memory_space<vmem>>, vector<1x128x128xbf16>
    %33 = vector.shape_cast %32 : vector<1x128x128xbf16> to vector<128x128xbf16>
    %cst_43 = arith.constant dense<0.000000e+00> : vector<16x128xf32>
    %34 = tpu.matmul %31, %33, %cst_43 {dimension_numbers = #tpu.dot_dimension_numbers<[1], [0], [0], [1], [0, 0, 1, 1], [], []>} : vector<16x128xbf16>, vector<128x128xbf16>, vector<16x128xf32> -> vector<16x128xf32>
    %35 = arith.addf %29, %34 : vector<16x128xf32>
    %c2 = arith.constant 2 : index
    %c0_44 = arith.constant 0 : index
    %36 = vector.load %arg12[%c2, %c0_44] : memref<18x128xf32, #tpu.memory_space<vmem>>, vector<16x128xf32>
    %37 = arith.truncf %36 : vector<16x128xf32> to vector<16x128xbf16>
    %c2_45 = arith.constant 2 : index
    %c0_46 = arith.constant 0 : index
    %c0_47 = arith.constant 0 : index
    %38 = vector.load %arg3[%c2_45, %c0_46, %c0_47] : memref<3x128x128xbf16, #tpu.memory_space<vmem>>, vector<1x128x128xbf16>
    %39 = vector.shape_cast %38 : vector<1x128x128xbf16> to vector<128x128xbf16>
    %cst_48 = arith.constant dense<0.000000e+00> : vector<16x128xf32>
    %40 = tpu.matmul %37, %39, %cst_48 {dimension_numbers = #tpu.dot_dimension_numbers<[1], [0], [0], [1], [0, 0, 1, 1], [], []>} : vector<16x128xbf16>, vector<128x128xbf16>, vector<16x128xf32> -> vector<16x128xf32>
    %41 = arith.addf %35, %40 : vector<16x128xf32>
    %42 = vector.broadcast %23 : vector<1x128xf32> to vector<16x128xf32>
    %43 = arith.mulf %41, %42 : vector<16x128xf32>
    %44 = vector.broadcast %24 : vector<1x128xf32> to vector<16x128xf32>
    %45 = arith.addf %43, %44 : vector<16x128xf32>
    %cst_49 = arith.constant 0.000000e+00 : f32
    %46 = vector.broadcast %cst_49 : f32 to vector<16x128xf32>
    %47 = arith.cmpf ogt, %45, %46 : vector<16x128xf32>
    %cst_50 = arith.constant 0.00999999977 : f32
    %48 = vector.broadcast %cst_50 : f32 to vector<16x128xf32>
    %49 = arith.mulf %48, %45 : vector<16x128xf32>
    %50 = arith.select %47, %45, %49 : vector<16x128xi1>, vector<16x128xf32>
    %c1_51 = arith.constant 1 : index
    %c0_52 = arith.constant 0 : index
    %51 = vector.load %arg13[%c1_51, %c0_52] : memref<18x128xf32, #tpu.memory_space<vmem>>, vector<16x128xf32>
    tpu.vector_store %arg13[%c1_51, %c0_52], %50 {strides = array<i32>} : memref<18x128xf32, #tpu.memory_space<vmem>>, vector<16x128xf32>,
    %c2_53 = arith.constant 2 : index
    %c0_54 = arith.constant 0 : index
    %52 = vector.load %arg9[%c2_53, %c0_54] : memref<5x128xf32, #tpu.memory_space<vmem>>, vector<1x128xf32>
    %c2_55 = arith.constant 2 : index
    %c0_56 = arith.constant 0 : index
    %53 = vector.load %arg10[%c2_55, %c0_56] : memref<5x128xf32, #tpu.memory_space<vmem>>, vector<1x128xf32>
    %c0_57 = arith.constant 0 : index
    %c0_58 = arith.constant 0 : index
    %54 = vector.load %arg13[%c0_57, %c0_58] : memref<18x128xf32, #tpu.memory_space<vmem>>, vector<16x128xf32>
    %55 = arith.truncf %54 : vector<16x128xf32> to vector<16x128xbf16>
    %c0_59 = arith.constant 0 : index
    %c0_60 = arith.constant 0 : index
    %c0_61 = arith.constant 0 : index
    %56 = vector.load %arg4[%c0_59, %c0_60, %c0_61] : memref<3x128x128xbf16, #tpu.memory_space<vmem>>, vector<1x128x128xbf16>
    %57 = vector.shape_cast %56 : vector<1x128x128xbf16> to vector<128x128xbf16>
    %cst_62 = arith.constant dense<0.000000e+00> : vector<16x128xf32>
    %58 = tpu.matmul %55, %57, %cst_62 {dimension_numbers = #tpu.dot_dimension_numbers<[1], [0], [0], [1], [0, 0, 1, 1], [], []>} : vector<16x128xbf16>, vector<128x128xbf16>, vector<16x128xf32> -> vector<16x128xf32>
    %c1_63 = arith.constant 1 : index
    %c0_64 = arith.constant 0 : index
    %59 = vector.load %arg13[%c1_63, %c0_64] : memref<18x128xf32, #tpu.memory_space<vmem>>, vector<16x128xf32>
    %60 = arith.truncf %59 : vector<16x128xf32> to vector<16x128xbf16>
    %c1_65 = arith.constant 1 : index
    %c0_66 = arith.constant 0 : index
    %c0_67 = arith.constant 0 : index
    %61 = vector.load %arg4[%c1_65, %c0_66, %c0_67] : memref<3x128x128xbf16, #tpu.memory_space<vmem>>, vector<1x128x128xbf16>
    %62 = vector.shape_cast %61 : vector<1x128x128xbf16> to vector<128x128xbf16>
    %cst_68 = arith.constant dense<0.000000e+00> : vector<16x128xf32>
    %63 = tpu.matmul %60, %62, %cst_68 {dimension_numbers = #tpu.dot_dimension_numbers<[1], [0], [0], [1], [0, 0, 1, 1], [], []>} : vector<16x128xbf16>, vector<128x128xbf16>, vector<16x128xf32> -> vector<16x128xf32>
    %64 = arith.addf %58, %63 : vector<16x128xf32>
    %c2_69 = arith.constant 2 : index
    %c0_70 = arith.constant 0 : index
    %65 = vector.load %arg13[%c2_69, %c0_70] : memref<18x128xf32, #tpu.memory_space<vmem>>, vector<16x128xf32>
    %66 = arith.truncf %65 : vector<16x128xf32> to vector<16x128xbf16>
    %c2_71 = arith.constant 2 : index
    %c0_72 = arith.constant 0 : index
    %c0_73 = arith.constant 0 : index
    %67 = vector.load %arg4[%c2_71, %c0_72, %c0_73] : memref<3x128x128xbf16, #tpu.memory_space<vmem>>, vector<1x128x128xbf16>
    %68 = vector.shape_cast %67 : vector<1x128x128xbf16> to vector<128x128xbf16>
    %cst_74 = arith.constant dense<0.000000e+00> : vector<16x128xf32>
    %69 = tpu.matmul %66, %68, %cst_74 {dimension_numbers = #tpu.dot_dimension_numbers<[1], [0], [0], [1], [0, 0, 1, 1], [], []>} : vector<16x128xbf16>, vector<128x128xbf16>, vector<16x128xf32> -> vector<16x128xf32>
    %70 = arith.addf %64, %69 : vector<16x128xf32>
    %71 = vector.broadcast %52 : vector<1x128xf32> to vector<16x128xf32>
    %72 = arith.mulf %70, %71 : vector<16x128xf32>
    %73 = vector.broadcast %53 : vector<1x128xf32> to vector<16x128xf32>
    %74 = arith.addf %72, %73 : vector<16x128xf32>
    %75 = arith.addf %74, %22 : vector<16x128xf32>
    %cst_75 = arith.constant 0.000000e+00 : f32
    %76 = vector.broadcast %cst_75 : f32 to vector<16x128xf32>
    %77 = arith.cmpf ogt, %75, %76 : vector<16x128xf32>
    %cst_76 = arith.constant 0.00999999977 : f32
    %78 = vector.broadcast %cst_76 : f32 to vector<16x128xf32>
    %79 = arith.mulf %78, %75 : vector<16x128xf32>
    %80 = arith.select %77, %75, %79 : vector<16x128xi1>, vector<16x128xf32>
    %c0_77 = arith.constant 0 : index
    %c0_78 = arith.constant 0 : index
    %c0_79 = arith.constant 0 : index
    %81 = vector.load %arg7[%c0_77, %c0_78, %c0_79] : memref<3x8x16xf32, #tpu.memory_space<vmem>>, vector<1x8x16xf32>
    %82 = vector.shape_cast %81 : vector<1x8x16xf32> to vector<8x16xf32>
    %cst_80 = arith.constant dense<0.000000e+00> : vector<8x128xf32>
    %83 = tpu.matmul %82, %80, %cst_80 {dimension_numbers = #tpu.dot_dimension_numbers<[1], [0], [0], [1], [0, 0, 1, 1], [], []>} : vector<8x16xf32>, vector<16x128xf32>, vector<8x128xf32> -> vector<8x128xf32>
    %c1_81 = arith.constant 1 : index
    %c0_82 = arith.constant 0 : index
    %c0_83 = arith.constant 0 : index
    %84 = vector.load %arg7[%c1_81, %c0_82, %c0_83] : memref<3x8x16xf32, #tpu.memory_space<vmem>>, vector<1x8x16xf32>
    %85 = vector.shape_cast %84 : vector<1x8x16xf32> to vector<8x16xf32>
    %cst_84 = arith.constant dense<0.000000e+00> : vector<8x128xf32>
    %86 = tpu.matmul %85, %80, %cst_84 {dimension_numbers = #tpu.dot_dimension_numbers<[1], [0], [0], [1], [0, 0, 1, 1], [], []>} : vector<8x16xf32>, vector<16x128xf32>, vector<8x128xf32> -> vector<8x128xf32>
    %87 = arith.maximumf %83, %86 : vector<8x128xf32>
    %c2_85 = arith.constant 2 : index
    %c0_86 = arith.constant 0 : index
    %c0_87 = arith.constant 0 : index
    %88 = vector.load %arg7[%c2_85, %c0_86, %c0_87] : memref<3x8x16xf32, #tpu.memory_space<vmem>>, vector<1x8x16xf32>
    %89 = vector.shape_cast %88 : vector<1x8x16xf32> to vector<8x16xf32>
    %cst_88 = arith.constant dense<0.000000e+00> : vector<8x128xf32>
    %90 = tpu.matmul %89, %80, %cst_88 {dimension_numbers = #tpu.dot_dimension_numbers<[1], [0], [0], [1], [0, 0, 1, 1], [], []>} : vector<8x16xf32>, vector<16x128xf32>, vector<8x128xf32> -> vector<8x128xf32>
    %91 = arith.maximumf %87, %90 : vector<8x128xf32>
    %c0_89 = arith.constant 0 : index
    %c0_90 = arith.constant 0 : index
    %c0_91 = arith.constant 0 : index
    %92 = vector.load %arg8[%c0_89, %c0_90, %c0_91] : memref<3x128x64xf32, #tpu.memory_space<vmem>>, vector<1x128x64xf32>
    %93 = vector.shape_cast %92 : vector<1x128x64xf32> to vector<128x64xf32>
    %cst_92 = arith.constant dense<0.000000e+00> : vector<8x64xf32>
    %94 = tpu.matmul %91, %93, %cst_92 {dimension_numbers = #tpu.dot_dimension_numbers<[1], [0], [0], [1], [0, 0, 1, 1], [], []>} : vector<8x128xf32>, vector<128x64xf32>, vector<8x64xf32> -> vector<8x64xf32>
    %c1_93 = arith.constant 1 : index
    %c0_94 = arith.constant 0 : index
    %c0_95 = arith.constant 0 : index
    %95 = vector.load %arg8[%c1_93, %c0_94, %c0_95] : memref<3x128x64xf32, #tpu.memory_space<vmem>>, vector<1x128x64xf32>
    %96 = vector.shape_cast %95 : vector<1x128x64xf32> to vector<128x64xf32>
    %cst_96 = arith.constant dense<0.000000e+00> : vector<8x64xf32>
    %97 = tpu.matmul %91, %96, %cst_96 {dimension_numbers = #tpu.dot_dimension_numbers<[1], [0], [0], [1], [0, 0, 1, 1], [], []>} : vector<8x128xf32>, vector<128x64xf32>, vector<8x64xf32> -> vector<8x64xf32>
    %98 = arith.maximumf %94, %97 : vector<8x64xf32>
    %c2_97 = arith.constant 2 : index
    %c0_98 = arith.constant 0 : index
    %c0_99 = arith.constant 0 : index
    %99 = vector.load %arg8[%c2_97, %c0_98, %c0_99] : memref<3x128x64xf32, #tpu.memory_space<vmem>>, vector<1x128x64xf32>
    %100 = vector.shape_cast %99 : vector<1x128x64xf32> to vector<128x64xf32>
    %cst_100 = arith.constant dense<0.000000e+00> : vector<8x64xf32>
    %101 = tpu.matmul %91, %100, %cst_100 {dimension_numbers = #tpu.dot_dimension_numbers<[1], [0], [0], [1], [0, 0, 1, 1], [], []>} : vector<8x128xf32>, vector<128x64xf32>, vector<8x64xf32> -> vector<8x64xf32>
    %102 = arith.maximumf %98, %101 : vector<8x64xf32>
    %c1_101 = arith.constant 1 : index
    %c0_102 = arith.constant 0 : index
    %103 = vector.load %arg14[%c1_101, %c0_102] : memref<10x64xf32, #tpu.memory_space<vmem>>, vector<8x64xf32>
    tpu.vector_store %arg14[%c1_101, %c0_102], %102 {strides = array<i32>} : memref<10x64xf32, #tpu.memory_space<vmem>>, vector<8x64xf32>,
    %c3 = arith.constant 3 : index
    %c0_103 = arith.constant 0 : index
    %104 = vector.load %arg9[%c3, %c0_103] : memref<5x128xf32, #tpu.memory_space<vmem>>, vector<1x64xf32>
    %c3_104 = arith.constant 3 : index
    %c0_105 = arith.constant 0 : index
    %105 = vector.load %arg10[%c3_104, %c0_105] : memref<5x128xf32, #tpu.memory_space<vmem>>, vector<1x64xf32>
    %c4 = arith.constant 4 : index
    %c0_106 = arith.constant 0 : index
    %106 = vector.load %arg9[%c4, %c0_106] : memref<5x128xf32, #tpu.memory_space<vmem>>, vector<1x64xf32>
    %c4_107 = arith.constant 4 : index
    %c0_108 = arith.constant 0 : index
    %107 = vector.load %arg10[%c4_107, %c0_108] : memref<5x128xf32, #tpu.memory_space<vmem>>, vector<1x64xf32>
    %c0_109 = arith.constant 0 : index
    %c0_110 = arith.constant 0 : index
    %108 = vector.load %arg14[%c0_109, %c0_110] : memref<10x64xf32, #tpu.memory_space<vmem>>, vector<8x64xf32>
    %109 = arith.truncf %108 : vector<8x64xf32> to vector<8x64xbf16>
    %c0_111 = arith.constant 0 : index
    %c0_112 = arith.constant 0 : index
    %c0_113 = arith.constant 0 : index
    %110 = vector.load %arg5[%c0_111, %c0_112, %c0_113] : memref<3x64x64xbf16, #tpu.memory_space<vmem>>, vector<1x64x64xbf16>
    %111 = vector.shape_cast %110 : vector<1x64x64xbf16> to vector<64x64xbf16>
    %cst_114 = arith.constant dense<0.000000e+00> : vector<8x64xf32>
    %112 = tpu.matmul %109, %111, %cst_114 {dimension_numbers = #tpu.dot_dimension_numbers<[1], [0], [0], [1], [0, 0, 1, 1], [], []>} : vector<8x64xbf16>, vector<64x64xbf16>, vector<8x64xf32> -> vector<8x64xf32>
    %c1_115 = arith.constant 1 : index
    %c0_116 = arith.constant 0 : index
    %113 = vector.load %arg14[%c1_115, %c0_116] : memref<10x64xf32, #tpu.memory_space<vmem>>, vector<8x64xf32>
    %114 = arith.truncf %113 : vector<8x64xf32> to vector<8x64xbf16>
    %c1_117 = arith.constant 1 : index
    %c0_118 = arith.constant 0 : index
    %c0_119 = arith.constant 0 : index
    %115 = vector.load %arg5[%c1_117, %c0_118, %c0_119] : memref<3x64x64xbf16, #tpu.memory_space<vmem>>, vector<1x64x64xbf16>
    %116 = vector.shape_cast %115 : vector<1x64x64xbf16> to vector<64x64xbf16>
    %cst_120 = arith.constant dense<0.000000e+00> : vector<8x64xf32>
    %117 = tpu.matmul %114, %116, %cst_120 {dimension_numbers = #tpu.dot_dimension_numbers<[1], [0], [0], [1], [0, 0, 1, 1], [], []>} : vector<8x64xbf16>, vector<64x64xbf16>, vector<8x64xf32> -> vector<8x64xf32>
    %118 = arith.addf %112, %117 : vector<8x64xf32>
    %c2_121 = arith.constant 2 : index
    %c0_122 = arith.constant 0 : index
    %119 = vector.load %arg14[%c2_121, %c0_122] : memref<10x64xf32, #tpu.memory_space<vmem>>, vector<8x64xf32>
    %120 = arith.truncf %119 : vector<8x64xf32> to vector<8x64xbf16>
    %c2_123 = arith.constant 2 : index
    %c0_124 = arith.constant 0 : index
    %c0_125 = arith.constant 0 : index
    %121 = vector.load %arg5[%c2_123, %c0_124, %c0_125] : memref<3x64x64xbf16, #tpu.memory_space<vmem>>, vector<1x64x64xbf16>
    %122 = vector.shape_cast %121 : vector<1x64x64xbf16> to vector<64x64xbf16>
    %cst_126 = arith.constant dense<0.000000e+00> : vector<8x64xf32>
    %123 = tpu.matmul %120, %122, %cst_126 {dimension_numbers = #tpu.dot_dimension_numbers<[1], [0], [0], [1], [0, 0, 1, 1], [], []>} : vector<8x64xbf16>, vector<64x64xbf16>, vector<8x64xf32> -> vector<8x64xf32>
    %124 = arith.addf %118, %123 : vector<8x64xf32>
    %125 = vector.broadcast %104 : vector<1x64xf32> to vector<8x64xf32>
    %126 = arith.mulf %124, %125 : vector<8x64xf32>
    %127 = vector.broadcast %105 : vector<1x64xf32> to vector<8x64xf32>
    %128 = arith.addf %126, %127 : vector<8x64xf32>
    %cst_127 = arith.constant 0.000000e+00 : f32
    %129 = vector.broadcast %cst_127 : f32 to vector<8x64xf32>
    %130 = arith.maximumf %128, %129 : vector<8x64xf32>
    %c1_128 = arith.constant 1 : index
    %c0_129 = arith.constant 0 : index
    %131 = vector.load %arg14[%c1_128, %c0_129] : memref<10x64xf32, #tpu.memory_space<vmem>>, vector<8x64xf32>
    %132 = arith.addf %131, %130 : vector<8x64xf32>
    %c1_130 = arith.constant 1 : index
    %c0_131 = arith.constant 0 : index
    %133 = vector.load %arg15[%c1_130, %c0_131] : memref<10x64xf32, #tpu.memory_space<vmem>>, vector<8x64xf32>
    tpu.vector_store %arg15[%c1_130, %c0_131], %132 {strides = array<i32>} : memref<10x64xf32, #tpu.memory_space<vmem>>, vector<8x64xf32>,
    %c0_132 = arith.constant 0 : index
    %c0_133 = arith.constant 0 : index
    %134 = vector.load %arg15[%c0_132, %c0_133] : memref<10x64xf32, #tpu.memory_space<vmem>>, vector<8x64xf32>
    %135 = arith.truncf %134 : vector<8x64xf32> to vector<8x64xbf16>
    %c0_134 = arith.constant 0 : index
    %c0_135 = arith.constant 0 : index
    %c0_136 = arith.constant 0 : index
    %136 = vector.load %arg5[%c0_134, %c0_135, %c0_136] : memref<3x64x64xbf16, #tpu.memory_space<vmem>>, vector<1x64x64xbf16>
    %137 = vector.shape_cast %136 : vector<1x64x64xbf16> to vector<64x64xbf16>
    %cst_137 = arith.constant dense<0.000000e+00> : vector<8x64xf32>
    %138 = tpu.matmul %135, %137, %cst_137 {dimension_numbers = #tpu.dot_dimension_numbers<[1], [0], [0], [1], [0, 0, 1, 1], [], []>} : vector<8x64xbf16>, vector<64x64xbf16>, vector<8x64xf32> -> vector<8x64xf32>
    %c1_138 = arith.constant 1 : index
    %c0_139 = arith.constant 0 : index
    %139 = vector.load %arg15[%c1_138, %c0_139] : memref<10x64xf32, #tpu.memory_space<vmem>>, vector<8x64xf32>
    %140 = arith.truncf %139 : vector<8x64xf32> to vector<8x64xbf16>
    %c1_140 = arith.constant 1 : index
    %c0_141 = arith.constant 0 : index
    %c0_142 = arith.constant 0 : index
    %141 = vector.load %arg5[%c1_140, %c0_141, %c0_142] : memref<3x64x64xbf16, #tpu.memory_space<vmem>>, vector<1x64x64xbf16>
    %142 = vector.shape_cast %141 : vector<1x64x64xbf16> to vector<64x64xbf16>
    %cst_143 = arith.constant dense<0.000000e+00> : vector<8x64xf32>
    %143 = tpu.matmul %140, %142, %cst_143 {dimension_numbers = #tpu.dot_dimension_numbers<[1], [0], [0], [1], [0, 0, 1, 1], [], []>} : vector<8x64xbf16>, vector<64x64xbf16>, vector<8x64xf32> -> vector<8x64xf32>
    %144 = arith.addf %138, %143 : vector<8x64xf32>
    %c2_144 = arith.constant 2 : index
    %c0_145 = arith.constant 0 : index
    %145 = vector.load %arg15[%c2_144, %c0_145] : memref<10x64xf32, #tpu.memory_space<vmem>>, vector<8x64xf32>
    %146 = arith.truncf %145 : vector<8x64xf32> to vector<8x64xbf16>
    %c2_146 = arith.constant 2 : index
    %c0_147 = arith.constant 0 : index
    %c0_148 = arith.constant 0 : index
    %147 = vector.load %arg5[%c2_146, %c0_147, %c0_148] : memref<3x64x64xbf16, #tpu.memory_space<vmem>>, vector<1x64x64xbf16>
    %148 = vector.shape_cast %147 : vector<1x64x64xbf16> to vector<64x64xbf16>
    %cst_149 = arith.constant dense<0.000000e+00> : vector<8x64xf32>
    %149 = tpu.matmul %146, %148, %cst_149 {dimension_numbers = #tpu.dot_dimension_numbers<[1], [0], [0], [1], [0, 0, 1, 1], [], []>} : vector<8x64xbf16>, vector<64x64xbf16>, vector<8x64xf32> -> vector<8x64xf32>
    %150 = arith.addf %144, %149 : vector<8x64xf32>
    %151 = vector.broadcast %104 : vector<1x64xf32> to vector<8x64xf32>
    %152 = arith.mulf %150, %151 : vector<8x64xf32>
    %153 = vector.broadcast %105 : vector<1x64xf32> to vector<8x64xf32>
    %154 = arith.addf %152, %153 : vector<8x64xf32>
    %cst_150 = arith.constant 0.000000e+00 : f32
    %155 = vector.broadcast %cst_150 : f32 to vector<8x64xf32>
    %156 = arith.maximumf %154, %155 : vector<8x64xf32>
    %c1_151 = arith.constant 1 : index
    %c0_152 = arith.constant 0 : index
    %157 = vector.load %arg14[%c1_151, %c0_152] : memref<10x64xf32, #tpu.memory_space<vmem>>, vector<8x64xf32>
    %158 = arith.addf %157, %156 : vector<8x64xf32>
    %c1_153 = arith.constant 1 : index
    %c0_154 = arith.constant 0 : index
    %159 = vector.load %arg15[%c1_153, %c0_154] : memref<10x64xf32, #tpu.memory_space<vmem>>, vector<8x64xf32>
    tpu.vector_store %arg15[%c1_153, %c0_154], %158 {strides = array<i32>} : memref<10x64xf32, #tpu.memory_space<vmem>>, vector<8x64xf32>,
    %c0_155 = arith.constant 0 : index
    %c0_156 = arith.constant 0 : index
    %160 = vector.load %arg15[%c0_155, %c0_156] : memref<10x64xf32, #tpu.memory_space<vmem>>, vector<8x64xf32>
    %161 = arith.truncf %160 : vector<8x64xf32> to vector<8x64xbf16>
    %c0_157 = arith.constant 0 : index
    %c0_158 = arith.constant 0 : index
    %c0_159 = arith.constant 0 : index
    %162 = vector.load %arg5[%c0_157, %c0_158, %c0_159] : memref<3x64x64xbf16, #tpu.memory_space<vmem>>, vector<1x64x64xbf16>
    %163 = vector.shape_cast %162 : vector<1x64x64xbf16> to vector<64x64xbf16>
    %cst_160 = arith.constant dense<0.000000e+00> : vector<8x64xf32>
    %164 = tpu.matmul %161, %163, %cst_160 {dimension_numbers = #tpu.dot_dimension_numbers<[1], [0], [0], [1], [0, 0, 1, 1], [], []>} : vector<8x64xbf16>, vector<64x64xbf16>, vector<8x64xf32> -> vector<8x64xf32>
    %c1_161 = arith.constant 1 : index
    %c0_162 = arith.constant 0 : index
    %165 = vector.load %arg15[%c1_161, %c0_162] : memref<10x64xf32, #tpu.memory_space<vmem>>, vector<8x64xf32>
    %166 = arith.truncf %165 : vector<8x64xf32> to vector<8x64xbf16>
    %c1_163 = arith.constant 1 : index
    %c0_164 = arith.constant 0 : index
    %c0_165 = arith.constant 0 : index
    %167 = vector.load %arg5[%c1_163, %c0_164, %c0_165] : memref<3x64x64xbf16, #tpu.memory_space<vmem>>, vector<1x64x64xbf16>
    %168 = vector.shape_cast %167 : vector<1x64x64xbf16> to vector<64x64xbf16>
    %cst_166 = arith.constant dense<0.000000e+00> : vector<8x64xf32>
    %169 = tpu.matmul %166, %168, %cst_166 {dimension_numbers = #tpu.dot_dimension_numbers<[1], [0], [0], [1], [0, 0, 1, 1], [], []>} : vector<8x64xbf16>, vector<64x64xbf16>, vector<8x64xf32> -> vector<8x64xf32>
    %170 = arith.addf %164, %169 : vector<8x64xf32>
    %c2_167 = arith.constant 2 : index
    %c0_168 = arith.constant 0 : index
    %171 = vector.load %arg15[%c2_167, %c0_168] : memref<10x64xf32, #tpu.memory_space<vmem>>, vector<8x64xf32>
    %172 = arith.truncf %171 : vector<8x64xf32> to vector<8x64xbf16>
    %c2_169 = arith.constant 2 : index
    %c0_170 = arith.constant 0 : index
    %c0_171 = arith.constant 0 : index
    %173 = vector.load %arg5[%c2_169, %c0_170, %c0_171] : memref<3x64x64xbf16, #tpu.memory_space<vmem>>, vector<1x64x64xbf16>
    %174 = vector.shape_cast %173 : vector<1x64x64xbf16> to vector<64x64xbf16>
    %cst_172 = arith.constant dense<0.000000e+00> : vector<8x64xf32>
    %175 = tpu.matmul %172, %174, %cst_172 {dimension_numbers = #tpu.dot_dimension_numbers<[1], [0], [0], [1], [0, 0, 1, 1], [], []>} : vector<8x64xbf16>, vector<64x64xbf16>, vector<8x64xf32> -> vector<8x64xf32>
    %176 = arith.addf %170, %175 : vector<8x64xf32>
    %177 = vector.broadcast %104 : vector<1x64xf32> to vector<8x64xf32>
    %178 = arith.mulf %176, %177 : vector<8x64xf32>
    %179 = vector.broadcast %105 : vector<1x64xf32> to vector<8x64xf32>
    %180 = arith.addf %178, %179 : vector<8x64xf32>
    %cst_173 = arith.constant 0.000000e+00 : f32
    %181 = vector.broadcast %cst_173 : f32 to vector<8x64xf32>
    %182 = arith.maximumf %180, %181 : vector<8x64xf32>
    %c1_174 = arith.constant 1 : index
    %c0_175 = arith.constant 0 : index
    %183 = vector.load %arg16[%c1_174, %c0_175] : memref<10x64xf32, #tpu.memory_space<vmem>>, vector<8x64xf32>
    tpu.vector_store %arg16[%c1_174, %c0_175], %182 {strides = array<i32>} : memref<10x64xf32, #tpu.memory_space<vmem>>, vector<8x64xf32>,
    %c0_176 = arith.constant 0 : index
    %c0_177 = arith.constant 0 : index
    %184 = vector.load %arg16[%c0_176, %c0_177] : memref<10x64xf32, #tpu.memory_space<vmem>>, vector<8x64xf32>
    %185 = arith.truncf %184 : vector<8x64xf32> to vector<8x64xbf16>
    %c0_178 = arith.constant 0 : index
    %c0_179 = arith.constant 0 : index
    %c0_180 = arith.constant 0 : index
    %186 = vector.load %arg6[%c0_178, %c0_179, %c0_180] : memref<3x64x64xbf16, #tpu.memory_space<vmem>>, vector<1x64x64xbf16>
    %187 = vector.shape_cast %186 : vector<1x64x64xbf16> to vector<64x64xbf16>
    %cst_181 = arith.constant dense<0.000000e+00> : vector<8x64xf32>
    %188 = tpu.matmul %185, %187, %cst_181 {dimension_numbers = #tpu.dot_dimension_numbers<[1], [0], [0], [1], [0, 0, 1, 1], [], []>} : vector<8x64xbf16>, vector<64x64xbf16>, vector<8x64xf32> -> vector<8x64xf32>
    %c1_182 = arith.constant 1 : index
    %c0_183 = arith.constant 0 : index
    %189 = vector.load %arg16[%c1_182, %c0_183] : memref<10x64xf32, #tpu.memory_space<vmem>>, vector<8x64xf32>
    %190 = arith.truncf %189 : vector<8x64xf32> to vector<8x64xbf16>
    %c1_184 = arith.constant 1 : index
    %c0_185 = arith.constant 0 : index
    %c0_186 = arith.constant 0 : index
    %191 = vector.load %arg6[%c1_184, %c0_185, %c0_186] : memref<3x64x64xbf16, #tpu.memory_space<vmem>>, vector<1x64x64xbf16>
    %192 = vector.shape_cast %191 : vector<1x64x64xbf16> to vector<64x64xbf16>
    %cst_187 = arith.constant dense<0.000000e+00> : vector<8x64xf32>
    %193 = tpu.matmul %190, %192, %cst_187 {dimension_numbers = #tpu.dot_dimension_numbers<[1], [0], [0], [1], [0, 0, 1, 1], [], []>} : vector<8x64xbf16>, vector<64x64xbf16>, vector<8x64xf32> -> vector<8x64xf32>
    %194 = arith.addf %188, %193 : vector<8x64xf32>
    %c2_188 = arith.constant 2 : index
    %c0_189 = arith.constant 0 : index
    %195 = vector.load %arg16[%c2_188, %c0_189] : memref<10x64xf32, #tpu.memory_space<vmem>>, vector<8x64xf32>
    %196 = arith.truncf %195 : vector<8x64xf32> to vector<8x64xbf16>
    %c2_190 = arith.constant 2 : index
    %c0_191 = arith.constant 0 : index
    %c0_192 = arith.constant 0 : index
    %197 = vector.load %arg6[%c2_190, %c0_191, %c0_192] : memref<3x64x64xbf16, #tpu.memory_space<vmem>>, vector<1x64x64xbf16>
    %198 = vector.shape_cast %197 : vector<1x64x64xbf16> to vector<64x64xbf16>
    %cst_193 = arith.constant dense<0.000000e+00> : vector<8x64xf32>
    %199 = tpu.matmul %196, %198, %cst_193 {dimension_numbers = #tpu.dot_dimension_numbers<[1], [0], [0], [1], [0, 0, 1, 1], [], []>} : vector<8x64xbf16>, vector<64x64xbf16>, vector<8x64xf32> -> vector<8x64xf32>
    %200 = arith.addf %194, %199 : vector<8x64xf32>
    %201 = vector.broadcast %106 : vector<1x64xf32> to vector<8x64xf32>
    %202 = arith.mulf %200, %201 : vector<8x64xf32>
    %203 = vector.broadcast %107 : vector<1x64xf32> to vector<8x64xf32>
    %204 = arith.addf %202, %203 : vector<8x64xf32>
    %cst_194 = arith.constant 0.000000e+00 : f32
    %205 = vector.broadcast %cst_194 : f32 to vector<8x64xf32>
    %206 = arith.maximumf %204, %205 : vector<8x64xf32>
    %c1_195 = arith.constant 1 : index
    %c0_196 = arith.constant 0 : index
    %207 = vector.load %arg16[%c1_195, %c0_196] : memref<10x64xf32, #tpu.memory_space<vmem>>, vector<8x64xf32>
    %208 = arith.addf %207, %206 : vector<8x64xf32>
    %c1_197 = arith.constant 1 : index
    %c0_198 = arith.constant 0 : index
    %209 = vector.load %arg15[%c1_197, %c0_198] : memref<10x64xf32, #tpu.memory_space<vmem>>, vector<8x64xf32>
    tpu.vector_store %arg15[%c1_197, %c0_198], %208 {strides = array<i32>} : memref<10x64xf32, #tpu.memory_space<vmem>>, vector<8x64xf32>,
    %c0_199 = arith.constant 0 : index
    %c0_200 = arith.constant 0 : index
    %210 = vector.load %arg15[%c0_199, %c0_200] : memref<10x64xf32, #tpu.memory_space<vmem>>, vector<8x64xf32>
    %211 = arith.truncf %210 : vector<8x64xf32> to vector<8x64xbf16>
    %c0_201 = arith.constant 0 : index
    %c0_202 = arith.constant 0 : index
    %c0_203 = arith.constant 0 : index
    %212 = vector.load %arg6[%c0_201, %c0_202, %c0_203] : memref<3x64x64xbf16, #tpu.memory_space<vmem>>, vector<1x64x64xbf16>
    %213 = vector.shape_cast %212 : vector<1x64x64xbf16> to vector<64x64xbf16>
    %cst_204 = arith.constant dense<0.000000e+00> : vector<8x64xf32>
    %214 = tpu.matmul %211, %213, %cst_204 {dimension_numbers = #tpu.dot_dimension_numbers<[1], [0], [0], [1], [0, 0, 1, 1], [], []>} : vector<8x64xbf16>, vector<64x64xbf16>, vector<8x64xf32> -> vector<8x64xf32>
    %c1_205 = arith.constant 1 : index
    %c0_206 = arith.constant 0 : index
    %215 = vector.load %arg15[%c1_205, %c0_206] : memref<10x64xf32, #tpu.memory_space<vmem>>, vector<8x64xf32>
    %216 = arith.truncf %215 : vector<8x64xf32> to vector<8x64xbf16>
    %c1_207 = arith.constant 1 : index
    %c0_208 = arith.constant 0 : index
    %c0_209 = arith.constant 0 : index
    %217 = vector.load %arg6[%c1_207, %c0_208, %c0_209] : memref<3x64x64xbf16, #tpu.memory_space<vmem>>, vector<1x64x64xbf16>
    %218 = vector.shape_cast %217 : vector<1x64x64xbf16> to vector<64x64xbf16>
    %cst_210 = arith.constant dense<0.000000e+00> : vector<8x64xf32>
    %219 = tpu.matmul %216, %218, %cst_210 {dimension_numbers = #tpu.dot_dimension_numbers<[1], [0], [0], [1], [0, 0, 1, 1], [], []>} : vector<8x64xbf16>, vector<64x64xbf16>, vector<8x64xf32> -> vector<8x64xf32>
    %220 = arith.addf %214, %219 : vector<8x64xf32>
    %c2_211 = arith.constant 2 : index
    %c0_212 = arith.constant 0 : index
    %221 = vector.load %arg15[%c2_211, %c0_212] : memref<10x64xf32, #tpu.memory_space<vmem>>, vector<8x64xf32>
    %222 = arith.truncf %221 : vector<8x64xf32> to vector<8x64xbf16>
    %c2_213 = arith.constant 2 : index
    %c0_214 = arith.constant 0 : index
    %c0_215 = arith.constant 0 : index
    %223 = vector.load %arg6[%c2_213, %c0_214, %c0_215] : memref<3x64x64xbf16, #tpu.memory_space<vmem>>, vector<1x64x64xbf16>
    %224 = vector.shape_cast %223 : vector<1x64x64xbf16> to vector<64x64xbf16>
    %cst_216 = arith.constant dense<0.000000e+00> : vector<8x64xf32>
    %225 = tpu.matmul %222, %224, %cst_216 {dimension_numbers = #tpu.dot_dimension_numbers<[1], [0], [0], [1], [0, 0, 1, 1], [], []>} : vector<8x64xbf16>, vector<64x64xbf16>, vector<8x64xf32> -> vector<8x64xf32>
    %226 = arith.addf %220, %225 : vector<8x64xf32>
    %227 = vector.broadcast %106 : vector<1x64xf32> to vector<8x64xf32>
    %228 = arith.mulf %226, %227 : vector<8x64xf32>
    %229 = vector.broadcast %107 : vector<1x64xf32> to vector<8x64xf32>
    %230 = arith.addf %228, %229 : vector<8x64xf32>
    %cst_217 = arith.constant 0.000000e+00 : f32
    %231 = vector.broadcast %cst_217 : f32 to vector<8x64xf32>
    %232 = arith.maximumf %230, %231 : vector<8x64xf32>
    %c1_218 = arith.constant 1 : index
    %c0_219 = arith.constant 0 : index
    %233 = vector.load %arg16[%c1_218, %c0_219] : memref<10x64xf32, #tpu.memory_space<vmem>>, vector<8x64xf32>
    %234 = arith.addf %233, %232 : vector<8x64xf32>
    %c1_220 = arith.constant 1 : index
    %c0_221 = arith.constant 0 : index
    %235 = vector.load %arg15[%c1_220, %c0_221] : memref<10x64xf32, #tpu.memory_space<vmem>>, vector<8x64xf32>
    tpu.vector_store %arg15[%c1_220, %c0_221], %234 {strides = array<i32>} : memref<10x64xf32, #tpu.memory_space<vmem>>, vector<8x64xf32>,
    %c0_222 = arith.constant 0 : index
    %c0_223 = arith.constant 0 : index
    %236 = vector.load %arg15[%c0_222, %c0_223] : memref<10x64xf32, #tpu.memory_space<vmem>>, vector<8x64xf32>
    %237 = arith.truncf %236 : vector<8x64xf32> to vector<8x64xbf16>
    %c0_224 = arith.constant 0 : index
    %c0_225 = arith.constant 0 : index
    %c0_226 = arith.constant 0 : index
    %238 = vector.load %arg6[%c0_224, %c0_225, %c0_226] : memref<3x64x64xbf16, #tpu.memory_space<vmem>>, vector<1x64x64xbf16>
    %239 = vector.shape_cast %238 : vector<1x64x64xbf16> to vector<64x64xbf16>
    %cst_227 = arith.constant dense<0.000000e+00> : vector<8x64xf32>
    %240 = tpu.matmul %237, %239, %cst_227 {dimension_numbers = #tpu.dot_dimension_numbers<[1], [0], [0], [1], [0, 0, 1, 1], [], []>} : vector<8x64xbf16>, vector<64x64xbf16>, vector<8x64xf32> -> vector<8x64xf32>
    %c1_228 = arith.constant 1 : index
    %c0_229 = arith.constant 0 : index
    %241 = vector.load %arg15[%c1_228, %c0_229] : memref<10x64xf32, #tpu.memory_space<vmem>>, vector<8x64xf32>
    %242 = arith.truncf %241 : vector<8x64xf32> to vector<8x64xbf16>
    %c1_230 = arith.constant 1 : index
    %c0_231 = arith.constant 0 : index
    %c0_232 = arith.constant 0 : index
    %243 = vector.load %arg6[%c1_230, %c0_231, %c0_232] : memref<3x64x64xbf16, #tpu.memory_space<vmem>>, vector<1x64x64xbf16>
    %244 = vector.shape_cast %243 : vector<1x64x64xbf16> to vector<64x64xbf16>
    %cst_233 = arith.constant dense<0.000000e+00> : vector<8x64xf32>
    %245 = tpu.matmul %242, %244, %cst_233 {dimension_numbers = #tpu.dot_dimension_numbers<[1], [0], [0], [1], [0, 0, 1, 1], [], []>} : vector<8x64xbf16>, vector<64x64xbf16>, vector<8x64xf32> -> vector<8x64xf32>
    %246 = arith.addf %240, %245 : vector<8x64xf32>
    %c2_234 = arith.constant 2 : index
    %c0_235 = arith.constant 0 : index
    %247 = vector.load %arg15[%c2_234, %c0_235] : memref<10x64xf32, #tpu.memory_space<vmem>>, vector<8x64xf32>
    %248 = arith.truncf %247 : vector<8x64xf32> to vector<8x64xbf16>
    %c2_236 = arith.constant 2 : index
    %c0_237 = arith.constant 0 : index
    %c0_238 = arith.constant 0 : index
    %249 = vector.load %arg6[%c2_236, %c0_237, %c0_238] : memref<3x64x64xbf16, #tpu.memory_space<vmem>>, vector<1x64x64xbf16>
    %250 = vector.shape_cast %249 : vector<1x64x64xbf16> to vector<64x64xbf16>
    %cst_239 = arith.constant dense<0.000000e+00> : vector<8x64xf32>
    %251 = tpu.matmul %248, %250, %cst_239 {dimension_numbers = #tpu.dot_dimension_numbers<[1], [0], [0], [1], [0, 0, 1, 1], [], []>} : vector<8x64xbf16>, vector<64x64xbf16>, vector<8x64xf32> -> vector<8x64xf32>
    %252 = arith.addf %246, %251 : vector<8x64xf32>
    %253 = vector.broadcast %106 : vector<1x64xf32> to vector<8x64xf32>
    %254 = arith.mulf %252, %253 : vector<8x64xf32>
    %255 = vector.broadcast %107 : vector<1x64xf32> to vector<8x64xf32>
    %256 = arith.addf %254, %255 : vector<8x64xf32>
    %cst_240 = arith.constant 0.000000e+00 : f32
    %257 = vector.broadcast %cst_240 : f32 to vector<8x64xf32>
    %258 = arith.maximumf %256, %257 : vector<8x64xf32>
    %c1_241 = arith.constant 1 : index
    %c0_242 = arith.constant 0 : index
    %259 = vector.load %arg14[%c1_241, %c0_242] : memref<10x64xf32, #tpu.memory_space<vmem>>, vector<8x64xf32>
    %260 = arith.addf %259, %258 : vector<8x64xf32>
    %c0_243 = arith.constant 0 : index
    %c0_244 = arith.constant 0 : index
    %261 = vector.load %arg11[%c0_243, %c0_244] : memref<8x64xf32, #tpu.memory_space<vmem>>, vector<8x64xf32>
    tpu.vector_store %arg11[%c0_243, %c0_244], %260 {strides = array<i32>} : memref<8x64xf32, #tpu.memory_space<vmem>>, vector<8x64xf32>,
    return
  }
  func.func @transform_0(%arg0: i32) -> (i32, i32) {
    %c0_i32 = arith.constant 0 : i32
    %c0_i32_0 = arith.constant 0 : i32
    return %arg0, %c0_i32 : i32, i32
  }
  func.func @transform_1(%arg0: i32) -> (i32, i32) {
    %c0_i32 = arith.constant 0 : i32
    %c0_i32_0 = arith.constant 0 : i32
    %c0_i32_1 = arith.constant 0 : i32
    return %c0_i32, %c0_i32_0 : i32, i32
  }
  func.func @transform_2(%arg0: i32) -> (i32, i32, i32) {
    %c0_i32 = arith.constant 0 : i32
    %c0_i32_0 = arith.constant 0 : i32
    %c0_i32_1 = arith.constant 0 : i32
    %c0_i32_2 = arith.constant 0 : i32
    return %c0_i32, %c0_i32_0, %c0_i32_1 : i32, i32, i32
  }
  func.func @transform_3(%arg0: i32) -> (i32, i32, i32) {
    %c0_i32 = arith.constant 0 : i32
    %c0_i32_0 = arith.constant 0 : i32
    %c0_i32_1 = arith.constant 0 : i32
    %c0_i32_2 = arith.constant 0 : i32
    return %c0_i32, %c0_i32_0, %c0_i32_1 : i32, i32, i32
  }
  func.func @transform_4(%arg0: i32) -> (i32, i32, i32) {
    %c0_i32 = arith.constant 0 : i32
    %c0_i32_0 = arith.constant 0 : i32
    %c0_i32_1 = arith.constant 0 : i32
    %c0_i32_2 = arith.constant 0 : i32
    return %c0_i32, %c0_i32_0, %c0_i32_1 : i32, i32, i32
  }
  func.func @transform_5(%arg0: i32) -> (i32, i32, i32) {
    %c0_i32 = arith.constant 0 : i32
    %c0_i32_0 = arith.constant 0 : i32
    %c0_i32_1 = arith.constant 0 : i32
    %c0_i32_2 = arith.constant 0 : i32
    return %c0_i32, %c0_i32_0, %c0_i32_1 : i32, i32, i32
  }
  func.func @transform_6(%arg0: i32) -> (i32, i32, i32) {
    %c0_i32 = arith.constant 0 : i32
    %c0_i32_0 = arith.constant 0 : i32
    %c0_i32_1 = arith.constant 0 : i32
    %c0_i32_2 = arith.constant 0 : i32
    return %c0_i32, %c0_i32_0, %c0_i32_1 : i32, i32, i32
  }
  func.func @transform_7(%arg0: i32) -> (i32, i32, i32) {
    %c0_i32 = arith.constant 0 : i32
    %c0_i32_0 = arith.constant 0 : i32
    %c0_i32_1 = arith.constant 0 : i32
    %c0_i32_2 = arith.constant 0 : i32
    return %c0_i32, %c0_i32_0, %c0_i32_1 : i32, i32, i32
  }
  func.func @transform_8(%arg0: i32) -> (i32, i32) {
    %c0_i32 = arith.constant 0 : i32
    %c0_i32_0 = arith.constant 0 : i32
    %c0_i32_1 = arith.constant 0 : i32
    return %c0_i32, %c0_i32_0 : i32, i32
  }
  func.func @transform_9(%arg0: i32) -> (i32, i32) {
    %c0_i32 = arith.constant 0 : i32
    %c0_i32_0 = arith.constant 0 : i32
    %c0_i32_1 = arith.constant 0 : i32
    return %c0_i32, %c0_i32_0 : i32, i32
  }
  func.func @transform_10(%arg0: i32) -> (i32, i32) {
    %c0_i32 = arith.constant 0 : i32
    %c0_i32_0 = arith.constant 0 : i32
    return %arg0, %c0_i32 : i32, i32
  }
}

</mosaic_0001>

<bundles_post_ra>
// kernel: rrr_block_forward.1
= control target key start
LH: loop header
LB: loop body
LE: loop exit
PB: predicated region body
PF: predicated region fallthrough
CT: control target
= control target key end

     0   :  { %s4596_s13 = smov 0   ;;  %s5479_s0 = inlined_call_operand.vmem [shape: f32[32,128], index: 0, kind: input, shape index: {}]   ;;  %s5480_s1 = inlined_call_operand.vmem [shape: bf16[128,128], index: 1, kind: input, shape index: {}]   ;;  %s5481_s2 = inlined_call_operand.vmem [shape: bf16[3,128,128], index: 2, kind: input, shape index: {}]   ;;  %s5482_s3 = inlined_call_operand.vmem [shape: bf16[3,128,128], index: 3, kind: input, shape index: {}]   ;;  %s5483_s4 = inlined_call_operand.vmem [shape: bf16[3,64,64], index: 4, kind: input, shape index: {}]   ;;  %s5484_s5 = inlined_call_operand.vmem [shape: bf16[3,64,64], index: 5, kind: input, shape index: {}]   ;;  %s5485_s6 = inlined_call_operand.vmem [shape: f32[3,8,16], index: 6, kind: input, shape index: {}]   ;;  %s5486_s7 = inlined_call_operand.vmem [shape: f32[3,128,64], index: 7, kind: input, shape index: {}]   ;;  %s5487_s8 = inlined_call_operand.vmem [shape: f32[5,128], index: 8, kind: input, shape index: {}]   ;;  %s5488_s9 = inlined_call_operand.vmem [shape: f32[5,128], index: 9, kind: input, shape index: {}]   ;;  %s5489_s10 = inlined_call_operand.vmem [shape: f32[16,64], index: 10, kind: output, shape index: {}]  }
   0x1 LB: > { %s4602_s14 = sadd.s32 4294967295, %s4536_s13   ;;  %p3192_p0 = scmp.ge.s32.totalorder %s4536_s13, 1  ;;  %s4536_s13 = sphi %s4596_s13, %s20_s13  }
   0x2   : > { %p313_p1 = scmp.lt.s32.totalorder %s4536_s13, 3 }
   0x4   : > { %p314_p2 = pnand %p3192_p0, %p313_p1 }
   0x5   : > { %v4402_v0 = vld [vmem:[%s5481_s2 + $0x40] sm:$0xff] (!%p314_p2)   ;;  %v4538_v1 = vmov (!%p314_p2), 0.0   ;;  %v4403_v2 = vld [vmem:[%s5481_s2 + $0x48] sm:$0xff] (!%p314_p2)   ;;  %vm4539_vm0 = vmmov (!%p314_p2), 0   ;;  %s3193_s19 = sshll.u32 (!%p314_p2), %s4602_s14, 1  ;;  %v4404_v3 = vld [vmem:[%s5481_s2 + $0x50] sm:$0xff] (!%p314_p2)  }
   0x6   : > { %317 = sbr.rel (%p314_p2) target bundleno = 2652 (0xa5c), region = 60  ;;  %3784 = vmatprep.subr.bf16.mxu1 (!%p314_p2), %v4538_v1  ;;  %361 = vst [vmem:[#allocation2] sm:$0x1] (!%p314_p2), %v4538_v1  ;;  %362 = vst [vmem:[#allocation2 + $0x11] sm:$0x1] (!%p314_p2), %v4538_v1  ;;  %3764 = vmatprep.subr.bf16.mxu0 (!%p314_p2), %v4538_v1  ;;  %p351_p3 = scmp.lt.s32.totalorder (!%p314_p2), %s3193_s19, 3 }
   0x7   : > { %363 = vst [vmem:[#allocation3] sm:$0x1] (!%p314_p2), %v4538_v1  ;;  %364 = vst [vmem:[#allocation3 + $0x11] sm:$0x1] (!%p314_p2), %v4538_v1  ;;  %3785 = vmatpush3.bf16.msra.mxu1 (!%p314_p2), %v4402_v0  ;;  %3800 = vmatprep.mubr.msk.bf16.mxu1 (!%p314_p2), %vm4539_vm0, %v4538_v1  ;;  %v4405_v6 = vld [vmem:[%s5481_s2 + $0x58] sm:$0xff] (!%p314_p2)   ;;  %v4406_v7 = vld [vmem:[%s5481_s2 + $0x60] sm:$0xff] (!%p314_p2)  }
   0x8   : > { %3786 = vmatprep.subr.bf16.mxu1 (!%p314_p2), %v4538_v1  ;;  %3780 = vmatprep.mubr.msk.bf16.mxu0 (!%p314_p2), %vm4539_vm0, %v4538_v1  ;;  %v4407_v8 = vld [vmem:[%s5481_s2 + $0x68] sm:$0xff] (!%p314_p2)   ;;  %v4408_v9 = vld [vmem:[%s5481_s2 + $0x70] sm:$0xff] (!%p314_p2)   ;;  %v4409_v10 = vld [vmem:[%s5481_s2 + $0x78] sm:$0xff] (!%p314_p2)   ;;  %vm1197_vm5 = vcmask (!%p314_p2), 130048   ;;  %vm365_vm6 = vcmask (!%p314_p2), 516096   ;;  %vm1685_vm7 = vcmask (!%p314_p2), 523264  }
   0x9   : > { %v4426_v11 = vld [vmem:[%s5480_s1] sm:$0xff] (!%p314_p2)   ;;  %v4427_v12 = vld [vmem:[%s5480_s1 + $0x8] sm:$0xff] (!%p314_p2)   ;;  %v4428_v15 = vld [vmem:[%s5480_s1 + $0x10] sm:$0xff] (!%p314_p2)   ;;  %366 = vst.msk [vmem:[#allocation4] sm:$0x1] (!%p314_p2), %vm365_vm6, %v4538_v1  ;;  %p356_p4 = scmp.lt.s32.totalorder (!%p314_p2), %s4602_s14, 1 }
   0xa   : > { %3765 = vmatpush3.bf16.msra.mxu0 (!%p314_p2), %v4426_v11  ;;  %v4410_v14 = vld [vmem:[%s5481_s2] sm:$0xff] (!%p314_p2)   ;;  %v4411_v16 = vld [vmem:[%s5481_s2 + $0x8] sm:$0xff] (!%p314_p2)   ;;  %v4429_v17 = vld [vmem:[%s5480_s1 + $0x18] sm:$0xff] (!%p314_p2)   ;;  %367 = vst.msk [vmem:[#allocation4 + $0x9] sm:$0x1] (!%p314_p2), %vm365_vm6, %v4538_v1 }
   0xb   : > { %3787 = vmatpush3.bf16.msra.mxu1 (!%p314_p2), %v4403_v2  ;;  %3766 = vmatprep.subr.bf16.mxu0 (!%p314_p2), %v4538_v1  ;;  %v4412_v18 = vld [vmem:[%s5481_s2 + $0x10] sm:$0xff] (!%p314_p2)   ;;  %v4430_v19 = vld [vmem:[%s5480_s1 + $0x20] sm:$0xff] (!%p314_p2)   ;;  %v4413_v20 = vld [vmem:[%s5481_s2 + $0x18] sm:$0xff] (!%p314_p2)   ;;  %368 = vst.msk [vmem:[#allocation5] sm:$0x1] (!%p314_p2), %vm365_vm6, %v4538_v1 }
   0xc   : > { %3788 = vmatprep.subr.bf16.mxu1 (!%p314_p2), %v4538_v1  ;;  %v4431_v21 = vld [vmem:[%s5480_s1 + $0x28] sm:$0xff] (!%p314_p2)   ;;  %v4414_v22 = vld [vmem:[%s5481_s2 + $0x20] sm:$0xff] (!%p314_p2)   ;;  %v4432_v23 = vld [vmem:[%s5480_s1 + $0x30] sm:$0xff] (!%p314_p2)   ;;  %369 = vst.msk [vmem:[#allocation5 + $0x9] sm:$0x1] (!%p314_p2), %vm365_vm6, %v4538_v1 }
   0xd   : > { %s5491_s19 = smov (!%p351_p3, %s3193_s19), 3  ;;  %v4415_v24 = vld [vmem:[%s5481_s2 + $0x28] sm:$0xff]   ;;  %v4433_v25 = vld [vmem:[%s5480_s1 + $0x38] sm:$0xff]   ;;  %v4416_v26 = vld [vmem:[%s5481_s2 + $0x30] sm:$0xff]   ;;  %370 = vst.msk [vmem:[#allocation6] sm:$0x1] %vm365_vm6, %v4538_v1 }
   0xe   : > { %s3194_s22 = sshll.u32 %s5491_s19, 3  ;;  %3767 = vmatpush3.bf16.msra.mxu0 %v4427_v12  ;;  %v4434_v27 = vld [vmem:[%s5482_s3 + $0x40] sm:$0xff]   ;;  %v4417_v28 = vld [vmem:[%s5481_s2 + $0x38] sm:$0xff]   ;;  %v4435_v31 = vld [vmem:[%s5482_s3 + $0x48] sm:$0xff]   ;;  %371 = vst.msk [vmem:[#allocation6 + $0x9] sm:$0x1] %vm365_vm6, %v4538_v1 }
   0xf   : > { %s354_s25 = scalar_lea.vmem %s5479_s0, %s3194_s22  ;;  %3789 = vmatpush3.bf16.msra.mxu1 %v4404_v3  ;;  %3768 = vmatprep.subr.bf16.mxu0 %v4538_v1  ;;  %v4418_v32 = vld [vmem:[%s5481_s2 + $0x80] sm:$0xff]   ;;  %v4436_v34 = vld [vmem:[%s5482_s3 + $0x50] sm:$0xff]   ;;  %v4419_v35 = vld [vmem:[%s5481_s2 + $0x88] sm:$0xff]   ;;  %s5493_s14 = smov (!%p356_p4, %s4602_s14), 1 }
  0x10   : > { %v372_v4 = vld [vmem:[%s354_s25] sm:$0xff]  ;;  %v373_v5 = vld [vmem:[%s354_s25 + $0x8] sm:$0xff]  ;;  %3790 = vmatprep.subr.bf16.mxu1 %v4538_v1  ;;  %v4420_v36 = vld [vmem:[%s5481_s2 + $0x90] sm:$0xff]   ;;  %s3195_s20 = sshll.u32 %s5493_s14, 3 }
  0x11   : > { %374 = vst [vmem:[#allocation2 + $0x1] sm:$0xff] %v372_v4  ;;  %375 = vst [vmem:[#allocation2 + $0x9] sm:$0xff] %v373_v5  ;;  %v519_v13 = vpack.c.bf16 %v373_v5, %v372_v4  ;;  %v4421_v37 = vld [vmem:[%s5481_s2 + $0x98] sm:$0xff]   ;;  %v4422_v38 = vld [vmem:[%s5481_s2 + $0xa0] sm:$0xff]   ;;  %s359_s23 = scalar_lea.vmem %s5489_s10, %s3195_s20 }
  0x12   : > { %3769 = vmatpush3.bf16.msra.mxu0 %v4428_v15  ;;  %v4423_v39 = vld [vmem:[%s5481_s2 + $0xa8] sm:$0xff]   ;;  %v4424_v40 = vld [vmem:[%s5481_s2 + $0xb0] sm:$0xff]   ;;  %v4425_v41 = vld [vmem:[%s5481_s2 + $0xb8] sm:$0xff]  }
  0x13   : > { %3791 = vmatpush3.bf16.msra.mxu1 %v4405_v6  ;;  %3770 = vmatprep.subr.bf16.mxu0 %v4538_v1  ;;  %v4437_v45 = vld [vmem:[%s5482_s3 + $0x58] sm:$0xff]   ;;  %v4438_v46 = vld [vmem:[%s5482_s3 + $0x60] sm:$0xff]   ;;  %v4439_v47 = vld [vmem:[%s5482_s3 + $0x68] sm:$0xff]  }
  0x14   : > { %3792 = vmatprep.subr.bf16.mxu1 %v4538_v1  ;;  %v4440_v48 = vld [vmem:[%s5482_s3 + $0x70] sm:$0xff]   ;;  %v4441_v49 = vld [vmem:[%s5482_s3 + $0x78] sm:$0xff]   ;;  %v3262_v54 = vld [vmem:[%s5487_s8 + $0x1] ss:$0 sm:$0xff] }
  0x15   : > { %v3263_v55 = vld [vmem:[%s5488_s9 + $0x1] ss:$0 sm:$0xff]  ;;  %v4447_v11 = vld [vmem:[%s5482_s3 + $0x28] sm:$0xff]   ;;  %v4448_v12 = vld [vmem:[%s5482_s3 + $0x30] sm:$0xff]  }
  0x16   : > { %3771 = vmatpush3.bf16.msra.mxu0 %v4429_v17  ;;  %v4442_v5 = vld [vmem:[%s5482_s3] sm:$0xff]  }
  0x17   : > { %3793 = vmatpush3.bf16.msra.mxu1 %v4406_v7  ;;  %3772 = vmatprep.subr.bf16.mxu0 %v4538_v1  ;;  %v4443_v7 = vld [vmem:[%s5482_s3 + $0x8] sm:$0xff]  }
  0x18   : > { %3794 = vmatprep.subr.bf16.mxu1 %v4538_v1  ;;  %v498_v29 = vld [vmem:[#allocation2] sm:$0xff]  ;;  %v499_v30 = vld [vmem:[#allocation2 + $0x8] sm:$0xff] }
  0x19   : > { %v500_v33 = vpack.c.bf16 %v499_v30, %v498_v29  ;;  %v715_v42 = vld [vmem:[#allocation2 + $0x2] sm:$0xff]  ;;  %v716_v43 = vld [vmem:[#allocation2 + $0xa] sm:$0xff]  ;;  %v3204_v29 = vld [vmem:[%s5487_s8] ss:$0 sm:$0xff] }
  0x1a   : > { %3773 = vmatpush3.bf16.msra.mxu0 %v4430_v19  ;;  %v717_v44 = vpack.c.bf16 %v716_v43, %v715_v42  ;;  %v4452_v19 = vld [vmem:[%s5482_s3 + $0x90] sm:$0xff]   ;;  %v3320_v30 = vld [vmem:[%s5487_s8 + $0x2] ss:$0 sm:$0xff] }
  0x1b   : > { %3795 = vmatpush3.bf16.msra.mxu1 %v4407_v8  ;;  %3774 = vmatprep.subr.bf16.mxu0 %v4538_v1  ;;  %v4444_v8 = vld [vmem:[%s5482_s3 + $0x10] sm:$0xff]  }
  0x1c   : > { %3796 = vmatprep.subr.bf16.mxu1 %v4538_v1 }
  0x1e   : > { %3775 = vmatpush3.bf16.msra.mxu0 %v4431_v21  ;;  %v4454_v21 = vld [vmem:[%s5482_s3 + $0xa0] sm:$0xff]  }
  0x1f   : > { %3797 = vmatpush3.bf16.msra.mxu1 %v4408_v9  ;;  %3776 = vmatprep.subr.bf16.mxu0 %v4538_v1  ;;  %v4445_v9 = vld [vmem:[%s5482_s3 + $0x18] sm:$0xff]  }
  0x20   : > { %3798 = vmatprep.subr.bf16.mxu1 %v4538_v1 }
  0x22   : > { %3777 = vmatpush3.bf16.msra.mxu0 %v4432_v23  ;;  %v4456_v23 = vld [vmem:[%s5482_s3 + $0xb0] sm:$0xff]  }
  0x23   : > { %3799 = vmatpush3.bf16.msra.mxu1 %v4409_v10  ;;  %3778 = vmatprep.subr.bf16.mxu0 %v4538_v1  ;;  %v4446_v10 = vld [vmem:[%s5482_s3 + $0x20] sm:$0xff]  }
  0x24   : > { %3804 = vmatprep.subr.bf16.mxu1 %v4538_v1 }
  0x26   : > { %3801 = vmatmul.mubr.bf16.vlgmr.msra.gmra.mrb[0].mxu1 %v519_v13  ;;  %3779 = vmatpush3.bf16.msra.mxu0 %v4433_v25 }
  0x27   : > { %3805 = vmatpush3.bf16.msra.mxu1 %v4410_v14  ;;  %3820 = vmatprep.mubr.msk.bf16.mxu1 %vm4539_vm0, %v4538_v1 }
  0x28   : > { %3806 = vmatprep.subr.bf16.mxu1 %v4538_v1  ;;  %3844 = vmatprep.subr.bf16.mxu0 %v4538_v1 }
  0x29   : > { %3781 = vmatmul.mubr.bf16.vlgmr.msra.gmra.mrb[0].mxu0 %v519_v13  ;;  %v4449_v13 = vld [vmem:[%s5482_s3 + $0x38] sm:$0xff]  }
  0x2a   : > { %3845 = vmatpush3.bf16.msra.mxu0 %v4434_v27  ;;  %3860 = vmatprep.mubr.msk.bf16.mxu0 %vm4539_vm0, %v4538_v1 }
  0x2b   : > { %3807 = vmatpush3.bf16.msra.mxu1 %v4411_v16  ;;  %3846 = vmatprep.subr.bf16.mxu0 %v4538_v1  ;;  %v4450_v16 = vld [vmem:[%s5482_s3 + $0x80] sm:$0xff]  }
  0x2c   : > { %3808 = vmatprep.subr.bf16.mxu1 %v4538_v1 }
  0x2e   : > { %3847 = vmatpush3.bf16.msra.mxu0 %v4435_v31 }
  0x2f   : > { %3809 = vmatpush3.bf16.msra.mxu1 %v4412_v18  ;;  %3848 = vmatprep.subr.bf16.mxu0 %v4538_v1  ;;  %v4451_v18 = vld [vmem:[%s5482_s3 + $0x88] sm:$0xff]  }
  0x30   : > { %3810 = vmatprep.subr.bf16.mxu1 %v4538_v1 }
  0x32   : > { %3849 = vmatpush3.bf16.msra.mxu0 %v4436_v34 }
  0x33   : > { %3811 = vmatpush3.bf16.msra.mxu1 %v4413_v20  ;;  %3850 = vmatprep.subr.bf16.mxu0 %v4538_v1  ;;  %v4453_v20 = vld [vmem:[%s5482_s3 + $0x98] sm:$0xff]  }
  0x34   : > { %3812 = vmatprep.subr.bf16.mxu1 %v4538_v1 }
  0x36   : > { %3851 = vmatpush3.bf16.msra.mxu0 %v4437_v45 }
  0x37   : > { %3813 = vmatpush3.bf16.msra.mxu1 %v4414_v22  ;;  %3852 = vmatprep.subr.bf16.mxu0 %v4538_v1  ;;  %v4455_v22 = vld [vmem:[%s5482_s3 + $0xa8] sm:$0xff]  }
  0x38   : > { %3814 = vmatprep.subr.bf16.mxu1 %v4538_v1 }
  0x3a   : > { %3853 = vmatpush3.bf16.msra.mxu0 %v4438_v46 }
  0x3b   : > { %3815 = vmatpush3.bf16.msra.mxu1 %v4415_v24  ;;  %3854 = vmatprep.subr.bf16.mxu0 %v4538_v1  ;;  %v4457_v24 = vld [vmem:[%s5482_s3 + $0xb8] sm:$0xff]  }
  0x3c   : > { %3816 = vmatprep.subr.bf16.mxu1 %v4538_v1 }
  0x3e   : > { %3855 = vmatpush3.bf16.msra.mxu0 %v4439_v47 }
  0x3f   : > { %3817 = vmatpush3.bf16.msra.mxu1 %v4416_v26  ;;  %3856 = vmatprep.subr.bf16.mxu0 %v4538_v1 }
  0x40   : > { %3818 = vmatprep.subr.bf16.mxu1 %v4538_v1 }
  0x42   : > { %3857 = vmatpush3.bf16.msra.mxu0 %v4440_v48 }
  0x43   : > { %3819 = vmatpush3.bf16.msra.mxu1 %v4417_v28  ;;  %3858 = vmatprep.subr.bf16.mxu0 %v4538_v1  ;;  %v4540_v28 = vmov 0.0|0.0  }
  0x44   : > { %3824 = vmatprep.subr.bf16.mxu1 %v4538_v1 }
  0x46   : > { %3821 = vmatmul.mubr.bf16.vlgmr.msra.gmra.mrb[0].mxu1 %v500_v33  ;;  %3859 = vmatpush3.bf16.msra.mxu0 %v4441_v49  ;;  %v3321_v33 = vld [vmem:[%s5488_s9 + $0x2] ss:$0 sm:$0xff] }
  0x47   : > { %3825 = vmatpush3.bf16.msra.mxu1 %v4418_v32  ;;  %3840 = vmatprep.mubr.msk.bf16.mxu1 %vm4539_vm0, %v4538_v1  ;;  %v3205_v32 = vld [vmem:[%s5488_s9] ss:$0 sm:$0xff] }
  0x48   : > { %3826 = vmatprep.subr.bf16.mxu1 %v4538_v1  ;;  %3864 = vmatprep.subr.bf16.mxu0 %v4538_v1 }
  0x4b   : > { %3827 = vmatpush3.bf16.msra.mxu1 %v4419_v35 }
  0x4c   : > { %3828 = vmatprep.subr.bf16.mxu1 %v4538_v1 }
  0x4f   : > { %3829 = vmatpush3.bf16.msra.mxu1 %v4420_v36 }
  0x50   : > { %3830 = vmatprep.subr.bf16.mxu1 %v4538_v1 }
  0x53   : > { %3831 = vmatpush3.bf16.msra.mxu1 %v4421_v37 }
  0x54   : > { %3832 = vmatprep.subr.bf16.mxu1 %v4538_v1 }
  0x57   : > { %3833 = vmatpush3.bf16.msra.mxu1 %v4422_v38 }
  0x58   : > { %3834 = vmatprep.subr.bf16.mxu1 %v4538_v1 }
  0x5b   : > { %3835 = vmatpush3.bf16.msra.mxu1 %v4423_v39 }
  0x5c   : > { %3836 = vmatprep.subr.bf16.mxu1 %v4538_v1 }
  0x5f   : > { %3837 = vmatpush3.bf16.msra.mxu1 %v4424_v40 }
  0x60   : > { %3838 = vmatprep.subr.bf16.mxu1 %v4538_v1 }
  0x63   : > { %3839 = vmatpush3.bf16.msra.mxu1 %v4425_v41 }
  0x64   : > { %4249 = vmatprep.subr.bf16.mxu1 %v4540_v28 }
  0x66   : > { %3841 = vmatmul.mubr.bf16.vlgmr.msra.gmra.mrb[0].mxu1 %v717_v44 }
  0x67   : > { %3915 = vmatprep.mubr.msk.f32.mxu1 %vm4539_vm0, %v4538_v1 }
  0xfc   : > { %v4787_v50 = vpop.f32.mrb[0].mxu0 }
  0xfd   : > { %v3782_v51 = vpop.f32.mrb[1].mxu0  ;;  %v487_v31 = vmul.f32 %v3204_v29, %v4787_v50 }
  0xfe   : > { %v4789_v52 = vpop.f32.mrb[2].mxu0 }
  0xff   : > { %v3783_v53 = vpop.f32.mrb[3].mxu0  ;;  %v488_v35 = vmul.f32 %v3204_v29, %v4789_v52  ;;  %v494_v39 = vadd.f32 %v3205_v32, %v487_v31  ;;  %v3327_v52 = vld [vmem:[%s5486_s7 + $0x80] sm:$0xff] }
 0x100   : > { %v3328_v53 = vld [vmem:[%s5486_s7 + $0x88] sm:$0xff]  ;;  %v1435_v29 = vld [vmem:[%s5486_s7 + $0x60] sm:$0xff] }
 0x101   : > { %v495_v43 = vadd.f32 %v3205_v32, %v488_v35  ;;  %v3339_v32 = vld [vmem:[%s5486_s7 + $0xe0] sm:$0xff]  ;;  %v1437_v35 = vld [vmem:[%s5486_s7 + $0x70] sm:$0xff] }
 0x139   : > { %v817_v56 = vpop.f32.mrb[0].mxu1 }
 0x13a   : > { %v830_v57 = vmul.f32 %v3262_v54, %v817_v56  ;;  %v3842_v58 = vpop.f32.mrb[1].mxu1  ;;  %v1423_v56 = vld [vmem:[%s5486_s7] sm:$0xff] }
 0x13b   : > { %v820_v59 = vpop.f32.mrb[2].mxu1  ;;  %v4280_v58 = vpack.c.bf16 %v3328_v53, %v3327_v52  ;;  %v3345_v52 = vld [vmem:[%s5486_s7 + $0x110] sm:$0xff]  ;;  %v3346_v53 = vld [vmem:[%s5486_s7 + $0x118] sm:$0xff] }
 0x13c   : > { %v836_v60 = vadd.f32 %v3263_v55, %v830_v57  ;;  %v831_v61 = vmul.f32 %v3262_v54, %v820_v59  ;;  %v3843_v62 = vpop.f32.mrb[3].mxu1  ;;  %v3323_v54 = vld [vmem:[%s5485_s6 + $0x8] sm:$0xff]  ;;  %v3329_v59 = vld [vmem:[%s5486_s7 + $0x90] sm:$0xff] }
 0x13d   : > { %v1424_v57 = vld [vmem:[%s5486_s7 + $0x8] sm:$0xff] }
 0x13e   : > { %vm838_vm1 = vcmp.gt.f32.partialorder %v836_v60, 0.0  ;;  %v840_v63 = vmul.f32 0.01, %v836_v60  ;;  %v837_v0 = vadd.f32 %v3263_v55, %v831_v61  ;;  %v1196_v55 = vld [vmem:[%s5485_s6] sm:$0xff]  ;;  %v3325_v61 = vld [vmem:[%s5485_s6 + $0x10] sm:$0xff]  ;;  %v4256_v62 = vpack.c.bf16 %v1424_v57, %v1423_v56  ;;  %v3348_v56 = vld [vmem:[%s5486_s7 + $0x128] sm:$0xff] }
 0x140   : > { %v842_v2 = vsel %vm838_vm1, %v836_v60, %v840_v63  ;;  %vm839_vm2 = vcmp.gt.f32.partialorder %v837_v0, 0.0  ;;  %v841_v3 = vmul.f32 0.01, %v837_v0  ;;  %v3330_v60 = vld [vmem:[%s5486_s7 + $0x98] sm:$0xff]  ;;  %v1425_v63 = vld [vmem:[%s5486_s7 + $0x10] sm:$0xff] }
 0x141   : > { %844 = vst [vmem:[#allocation3 + $0x1] sm:$0xff] %v842_v2 }
 0x142   : > { %v843_v4 = vsel %vm839_vm2, %v837_v0, %v841_v3  ;;  %v1426_v0 = vld [vmem:[%s5486_s7 + $0x18] sm:$0xff]  ;;  %v3331_v3 = vld [vmem:[%s5486_s7 + $0xa0] sm:$0xff] }
 0x143   : > { %845 = vst [vmem:[#allocation3 + $0x9] sm:$0xff] %v843_v4  ;;  %v869_v6 = vpack.c.bf16 %v843_v4, %v842_v2  ;;  %v4283_v2 = vpack.c.bf16 %v3330_v60, %v3329_v59  ;;  %v3332_v4 = vld [vmem:[%s5486_s7 + $0xa8] sm:$0xff]  ;;  %v3350_v59 = vld [vmem:[%s5486_s7 + $0x138] sm:$0xff] }
 0x145   : > { %3861 = vmatmul.mubr.bf16.vlgmr.msra.gmra.mrb[4].mxu0 %v869_v6  ;;  %v1427_v6 = vld [vmem:[%s5486_s7 + $0x20] sm:$0xff] }
 0x146   : > { %3865 = vmatpush3.bf16.msra.mxu0 %v4442_v5  ;;  %3880 = vmatprep.mubr.msk.bf16.mxu0 %vm4539_vm0, %v4538_v1  ;;  %v4259_v5 = vpack.c.bf16 %v1426_v0, %v1425_v63  ;;  %v3353_v0 = vld [vmem:[%s5486_s7 + $0x150] sm:$0xff] }
 0x147   : > { %3866 = vmatprep.subr.bf16.mxu0 %v4538_v1 }
 0x148   : > { %v848_v15 = vld [vmem:[#allocation3] sm:$0xff] }
 0x14a   : > { %3867 = vmatpush3.bf16.msra.mxu0 %v4443_v7  ;;  %v849_v14 = vld [vmem:[#allocation3 + $0x8] sm:$0xff]  ;;  %v1428_v7 = vld [vmem:[%s5486_s7 + $0x28] sm:$0xff] }
 0x14b   : > { %3868 = vmatprep.subr.bf16.mxu0 %v4538_v1  ;;  %v850_v17 = vpack.c.bf16 %v849_v14, %v848_v15  ;;  %v1065_v25 = vld [vmem:[#allocation3 + $0x2] sm:$0xff]  ;;  %v1066_v26 = vld [vmem:[#allocation3 + $0xa] sm:$0xff] }
 0x14c   : > { %v1067_v27 = vpack.c.bf16 %v1066_v26, %v1065_v25  ;;  %v3335_v15 = vld [vmem:[%s5486_s7 + $0xc0] sm:$0xff]  ;;  %v1434_v25 = vld [vmem:[%s5486_s7 + $0x58] sm:$0xff] }
 0x14e   : > { %3869 = vmatpush3.bf16.msra.mxu0 %v4444_v8  ;;  %v4286_v8 = vpack.c.bf16 %v3332_v4, %v3331_v3  ;;  %v3355_v4 = vld [vmem:[%s5486_s7 + $0x160] sm:$0xff] }
 0x14f   : > { %3870 = vmatprep.subr.bf16.mxu0 %v4538_v1 }
 0x152   : > { %3871 = vmatpush3.bf16.msra.mxu0 %v4445_v9  ;;  %v3333_v9 = vld [vmem:[%s5486_s7 + $0xb0] sm:$0xff] }
 0x153   : > { %3872 = vmatprep.subr.bf16.mxu0 %v4538_v1 }
 0x156   : > { %3873 = vmatpush3.bf16.msra.mxu0 %v4446_v10  ;;  %v3334_v10 = vld [vmem:[%s5486_s7 + $0xb8] sm:$0xff] }
 0x157   : > { %3874 = vmatprep.subr.bf16.mxu0 %v4538_v1  ;;  %v4289_v14 = vpack.c.bf16 %v3334_v10, %v3333_v9  ;;  %v4458_v10 = vld [vmem:[%s5483_s4 + $0x20] sm:$0xff]  }
 0x15a   : > { %3875 = vmatpush3.bf16.msra.mxu0 %v4447_v11  ;;  %v4262_v11 = vpack.c.bf16 %v1428_v7, %v1427_v6  ;;  %v3357_v7 = vld [vmem:[%s5486_s7 + $0x170] sm:$0xff] }
 0x15b   : > { %3876 = vmatprep.subr.bf16.mxu0 %v4538_v1 }
 0x15e   : > { %3877 = vmatpush3.bf16.msra.mxu0 %v4448_v12  ;;  %v1429_v12 = vld [vmem:[%s5486_s7 + $0x30] sm:$0xff] }
 0x15f   : > { %3878 = vmatprep.subr.bf16.mxu0 %v4538_v1 }
 0x162   : > { %3879 = vmatpush3.bf16.msra.mxu0 %v4449_v13  ;;  %v1430_v13 = vld [vmem:[%s5486_s7 + $0x38] sm:$0xff] }
 0x163   : > { %3884 = vmatprep.subr.bf16.mxu0 %v4538_v1 }
 0x165   : > { %3881 = vmatmul.mubr.bf16.vlgmr.msra.gmra.mrb[4].mxu0 %v850_v17  ;;  %v4265_v17 = vpack.c.bf16 %v1430_v13, %v1429_v12  ;;  %v4461_v12 = vld [vmem:[%s5483_s4 + $0x38] sm:$0xff]  }
 0x166   : > { %3885 = vmatpush3.bf16.msra.mxu0 %v4450_v16  ;;  %3900 = vmatprep.mubr.msk.bf16.mxu0 %vm4539_vm0, %v4538_v1  ;;  %v3336_v16 = vld [vmem:[%s5486_s7 + $0xc8] sm:$0xff] }
 0x167   : > { %3886 = vmatprep.subr.bf16.mxu0 %v4538_v1 }
 0x16a   : > { %3887 = vmatpush3.bf16.msra.mxu0 %v4451_v18  ;;  %v1431_v18 = vld [vmem:[%s5486_s7 + $0x40] sm:$0xff] }
 0x16b   : > { %3888 = vmatprep.subr.bf16.mxu0 %v4538_v1 }
 0x16e   : > { %3889 = vmatpush3.bf16.msra.mxu0 %v4452_v19  ;;  %v1432_v19 = vld [vmem:[%s5486_s7 + $0x48] sm:$0xff] }
 0x16f   : > { %3890 = vmatprep.subr.bf16.mxu0 %v4538_v1 }
 0x172   : > { %3891 = vmatpush3.bf16.msra.mxu0 %v4453_v20  ;;  %v4292_v20 = vpack.c.bf16 %v3336_v16, %v3335_v15 }
 0x173   : > { %3892 = vmatprep.subr.bf16.mxu0 %v4538_v1 }
 0x176   : > { %3893 = vmatpush3.bf16.msra.mxu0 %v4454_v21  ;;  %v3337_v21 = vld [vmem:[%s5486_s7 + $0xd0] sm:$0xff] }
 0x177   : > { %3894 = vmatprep.subr.bf16.mxu0 %v4538_v1 }
 0x17a   : > { %3895 = vmatpush3.bf16.msra.mxu0 %v4455_v22  ;;  %v3338_v22 = vld [vmem:[%s5486_s7 + $0xd8] sm:$0xff] }
 0x17b   : > { %3896 = vmatprep.subr.bf16.mxu0 %v4538_v1  ;;  %v4295_v26 = vpack.c.bf16 %v3338_v22, %v3337_v21  ;;  %v4462_v22 = vld [vmem:[%s5483_s4] sm:$0xff]  }
 0x17e   : > { %3897 = vmatpush3.bf16.msra.mxu0 %v4456_v23  ;;  %v4268_v23 = vpack.c.bf16 %v1432_v19, %v1431_v18 }
 0x17f   : > { %3898 = vmatprep.subr.bf16.mxu0 %v4538_v1 }
 0x182   : > { %3899 = vmatpush3.bf16.msra.mxu0 %v4457_v24  ;;  %v1433_v24 = vld [vmem:[%s5486_s7 + $0x50] sm:$0xff] }
 0x183   : > { %4246 = vmatprep.subr.bf16.mxu0 %v4540_v28 }
 0x185   : > { %3901 = vmatmul.mubr.bf16.vlgmr.msra.gmra.mrb[4].mxu0 %v1067_v27  ;;  %v4271_v27 = vpack.c.bf16 %v1434_v25, %v1433_v24  ;;  %v4463_v24 = vld [vmem:[%s5483_s4 + $0x8] sm:$0xff]   ;;  %v4464_v25 = vld [vmem:[%s5483_s4 + $0x10] sm:$0xff]  }
 0x186   : > { %3908 = vmatprep.mubr.msk.f32.mxu0 %vm4539_vm0, %v4538_v1 }
 0x258   : > { %v1167_v34 = vpop.f32.mrb[4].mxu0 }
 0x259   : > { %v1180_v36 = vmul.f32 %v3320_v30, %v1167_v34  ;;  %v3902_v37 = vpop.f32.mrb[5].mxu0 }
 0x25a   : > { %v1170_v38 = vpop.f32.mrb[6].mxu0 }
 0x25b   : > { %v1186_v40 = vadd.f32 %v3321_v33, %v1180_v36  ;;  %v1181_v41 = vmul.f32 %v3320_v30, %v1170_v38  ;;  %v3903_v42 = vpop.f32.mrb[7].mxu0  ;;  %v1436_v30 = vld [vmem:[%s5486_s7 + $0x68] sm:$0xff]  ;;  %v1438_v36 = vld [vmem:[%s5486_s7 + $0x78] sm:$0xff]  ;;  %v3341_v38 = vld [vmem:[%s5486_s7 + $0xf0] sm:$0xff] }
 0x25c   : > { %v4274_v31 = vpack.c.bf16 %v1436_v30, %v1435_v29  ;;  %v4277_v37 = vpack.c.bf16 %v1438_v36, %v1437_v35  ;;  %v4466_v29 = vld [vmem:[%s5483_s4 + $0x40] sm:$0xff]  }
 0x25d   : > { %v1188_v44 = vadd.f32 %v1186_v40, %v494_v39  ;;  %v1187_v45 = vadd.f32 %v3321_v33, %v1181_v41  ;;  %v3340_v33 = vld [vmem:[%s5486_s7 + $0xe8] sm:$0xff]  ;;  %v3342_v39 = vld [vmem:[%s5486_s7 + $0xf8] sm:$0xff]  ;;  %v4470_v36 = vld [vmem:[%s5483_s4 + $0x20] sm:$0xff]  }
 0x25e   : > { %v4298_v34 = vpack.c.bf16 %v3340_v33, %v3339_v32  ;;  %v4301_v40 = vpack.c.bf16 %v3342_v39, %v3341_v38  ;;  %v4468_v32 = vld [vmem:[%s5483_s4 + $0x50] sm:$0xff]   ;;  %v4469_v33 = vld [vmem:[%s5483_s4 + $0x58] sm:$0xff]  }
 0x25f   : > { %v1192_v46 = vmul.f32 0.01, %v1188_v44  ;;  %v1189_v47 = vadd.f32 %v1187_v45, %v495_v43  ;;  %vm1190_vm3 = vcmp.gt.f32.partialorder %v1188_v44, 0.0  ;;  %v4472_v38 = vld [vmem:[%s5483_s4 + $0x30] sm:$0xff]   ;;  %v4473_v39 = vld [vmem:[%s5483_s4 + $0x38] sm:$0xff]  }
 0x261   : > { %vm1191_vm4 = vcmp.gt.f32.partialorder %v1189_v47, 0.0  ;;  %v1193_v48 = vmul.f32 0.01, %v1189_v47  ;;  %v1194_v49 = vsel %vm1190_vm3, %v1188_v44, %v1192_v46  ;;  %v3343_v46 = vld [vmem:[%s5486_s7 + $0x100] sm:$0xff] }
 0x263   : > { %v1195_v50 = vsel %vm1191_vm4, %v1189_v47, %v1193_v48  ;;  %v3344_v47 = vld [vmem:[%s5486_s7 + $0x108] sm:$0xff] }
 0x264   : > { %v4247_v51 = vpack.c.bf16 %v1195_v50, %v1194_v49  ;;  %v4304_v49 = vpack.c.bf16 %v3344_v47, %v3343_v46 }
 0x266   : > { %4248 = vmatpush3.bf16.msra.mxu0 %v4247_v51  ;;  %4251 = vmatpush3.bf16.msra.mxu1 %v4247_v51 }
 0x267   : > { %4252 = vmatprep.subr.bf16.mxu1 %v4540_v28  ;;  %4279 = vmatprep.subr.bf16.mxu0 %v4540_v28 }
 0x269   : > { %3916 = vmatmul.mubr.msk.f32.vlgmr.msra.gmra.mrb[4].mxu1 %vm1197_vm5, %v3323_v54  ;;  %3909 = vmatmul.mubr.msk.f32.vlgmr.msra.gmra.mrb[8].mxu0 %vm1197_vm5, %v1196_v55  ;;  %v4307_v54 = vpack.c.bf16 %v3346_v53, %v3345_v52  ;;  %v3347_v55 = vld [vmem:[%s5486_s7 + $0x120] sm:$0xff]  ;;  %v4475_v53 = vld [vmem:[%s5483_s4 + $0x8] sm:$0xff]  }
 0x26a   : > { %4254 = vmatpush3.bf16.msra.mxu1 %v4247_v51  ;;  %3922 = vmatprep.mubr.msk.f32.mxu1 %vm4539_vm0, %v4538_v1  ;;  %v4310_v57 = vpack.c.bf16 %v3348_v56, %v3347_v55  ;;  %v4477_v55 = vld [vmem:[%s5483_s4 + $0x18] sm:$0xff]  }
 0x26b   : > { %4255 = vmatprep.subr.bf16.mxu1 %v4540_v28  ;;  %4281 = vmatpush3.bf16.msra.mxu0 %v4280_v58  ;;  %v3349_v58 = vld [vmem:[%s5486_s7 + $0x130] sm:$0xff] }
 0x26c   : > { %4282 = vmatprep.subr.bf16.mxu0 %v4540_v28  ;;  %3992 = vmatprep.mubr.msk.f32.mxu0 %vm4539_vm0, %v4538_v1  ;;  %v4313_v60 = vpack.c.bf16 %v3350_v59, %v3349_v58  ;;  %v4479_v59 = vld [vmem:[%s5483_s4 + $0x48] sm:$0xff]  }
 0x26d   : > { %3923 = vmatmul.mubr.msk.f32.vlgmr.msra.gmra.mrb[6].mxu1 %vm1197_vm5, %v3325_v61  ;;  %v3351_v61 = vld [vmem:[%s5486_s7 + $0x140] sm:$0xff] }
 0x26e   : > { %4257 = vmatpush3.bf16.msra.mxu1 %v4256_v62  ;;  %3957 = vmatprep.mubr.msk.f32.mxu1 %vm4539_vm0, %v4538_v1  ;;  %v3352_v62 = vld [vmem:[%s5486_s7 + $0x148] sm:$0xff] }
 0x26f   : > { %4258 = vmatprep.subr.bf16.mxu1 %v4540_v28  ;;  %4284 = vmatpush3.bf16.msra.mxu0 %v4283_v2  ;;  %v4316_v63 = vpack.c.bf16 %v3352_v62, %v3351_v61  ;;  %v3354_v2 = vld [vmem:[%s5486_s7 + $0x158] sm:$0xff] }
 0x270   : > { %4285 = vmatprep.subr.bf16.mxu0 %v4540_v28  ;;  %v4319_v3 = vpack.c.bf16 %v3354_v2, %v3353_v0  ;;  %v4481_v61 = vld [vmem:[%s5483_s4 + $0x58] sm:$0xff]   ;;  %v4482_v0 = vld [vmem:[%s5483_s4 + $0x20] sm:$0xff]   ;;  %v4483_v2 = vld [vmem:[%s5483_s4 + $0x28] sm:$0xff]  }
 0x272   : > { %4260 = vmatpush3.bf16.msra.mxu1 %v4259_v5  ;;  %v3356_v5 = vld [vmem:[%s5486_s7 + $0x168] sm:$0xff] }
 0x273   : > { %4261 = vmatprep.subr.bf16.mxu1 %v4540_v28  ;;  %4287 = vmatpush3.bf16.msra.mxu0 %v4286_v8  ;;  %v4322_v6 = vpack.c.bf16 %v3356_v5, %v3355_v4  ;;  %v3358_v8 = vld [vmem:[%s5486_s7 + $0x178] sm:$0xff] }
 0x274   : > { %4288 = vmatprep.subr.bf16.mxu0 %v4540_v28  ;;  %v4325_v9 = vpack.c.bf16 %v3358_v8, %v3357_v7  ;;  %v4485_v4 = vld [vmem:[%s5483_s4 + $0x38] sm:$0xff]  }
 0x276   : > { %4263 = vmatpush3.bf16.msra.mxu1 %v4262_v11  ;;  %v4459_v11 = vld [vmem:[%s5483_s4 + $0x28] sm:$0xff]  }
 0x277   : > { %4264 = vmatprep.subr.bf16.mxu1 %v4540_v28  ;;  %4290 = vmatpush3.bf16.msra.mxu0 %v4289_v14 }
 0x278   : > { %4291 = vmatprep.subr.bf16.mxu0 %v4540_v28 }
 0x27a   : > { %4266 = vmatpush3.bf16.msra.mxu1 %v4265_v17 }
 0x27b   : > { %4267 = vmatprep.subr.bf16.mxu1 %v4540_v28  ;;  %4293 = vmatpush3.bf16.msra.mxu0 %v4292_v20 }
 0x27c   : > { %4294 = vmatprep.subr.bf16.mxu0 %v4540_v28 }
 0x27e   : > { %4269 = vmatpush3.bf16.msra.mxu1 %v4268_v23 }
 0x27f   : > { %4270 = vmatprep.subr.bf16.mxu1 %v4540_v28  ;;  %4296 = vmatpush3.bf16.msra.mxu0 %v4295_v26  ;;  %v4465_v26 = vld [vmem:[%s5483_s4 + $0x18] sm:$0xff]  }
 0x280   : > { %4297 = vmatprep.subr.bf16.mxu0 %v4540_v28 }
 0x282   : > { %4272 = vmatpush3.bf16.msra.mxu1 %v4271_v27 }
 0x283   : > { %4273 = vmatprep.subr.bf16.mxu1 %v4540_v28  ;;  %4299 = vmatpush3.bf16.msra.mxu0 %v4298_v34 }
 0x284   : > { %4300 = vmatprep.subr.bf16.mxu0 %v4540_v28 }
 0x286   : > { %4275 = vmatpush3.bf16.msra.mxu1 %v4274_v31  ;;  %v4467_v31 = vld [vmem:[%s5483_s4 + $0x48] sm:$0xff]  }
 0x287   : > { %4276 = vmatprep.subr.bf16.mxu1 %v4540_v28  ;;  %4302 = vmatpush3.bf16.msra.mxu0 %v4301_v40  ;;  %v5164_v40 = vld [vmem:[%s5487_s8 + $0x3] ss:$0 sm:$0xff] }
 0x288   : > { %4030 = vmatprep.subr.bf16.mxu0 %v4538_v1 }
 0x28a   : > { %4278 = vmatpush3.bf16.msra.mxu1 %v4277_v37  ;;  %v4471_v37 = vld [vmem:[%s5483_s4 + $0x28] sm:$0xff]  }
 0x28b   : > { %4303 = vmatprep.subr.bf16.mxu1 %v4540_v28 }
 0x33c   : > { %v1267_v41 = vpop.f32.mrb[8].mxu0  ;;  %v1342_v42 = vpop.f32.mrb[4].mxu1 }
 0x33d   : > { %v1346_v43 = vmax.f32 %v1267_v41, %v1342_v42  ;;  %v3917_v44 = vpop.f32.mrb[5].mxu1  ;;  %v3910_v45 = vpop.f32.mrb[9].mxu0  ;;  %v5169_v41 = vld [vmem:[%s5488_s9 + $0x3] ss:$0 sm:$0xff] }
 0x340   : > { %v1418_v48 = vpop.f32.mrb[6].mxu1 }
 0x341   : > { %v1422_v50 = vmax.f32 %v1346_v43, %v1418_v48  ;;  %v3924_v51 = vpop.f32.mrb[7].mxu1 }
 0x342   : > { %v4474_v51 = vld [vmem:[%s5483_s4] sm:$0xff]  }
 0x343   : > { %3958 = vmatmul.mubr.f32.vlgmr.msra.gmra.mrb[8].mxu1 %v1422_v50  ;;  %3993 = vmatmul.mubr.f32.vlgmr.msra.gmra.mrb[10].mxu0 %v1422_v50 }
 0x344   : > { %4305 = vmatpush3.bf16.msra.mxu1 %v4304_v49  ;;  %4027 = vmatprep.mubr.msk.f32.mxu1 %vm4539_vm0, %v4538_v1 }
 0x345   : > { %4306 = vmatprep.subr.bf16.mxu1 %v4540_v28  ;;  %4038 = vmatprep.mubr.msk.bf16.mxu0 %vm4539_vm0, %v4538_v1 }
 0x346   : > { %4031 = vmatpush3.bf16.msra.mxu0 %v4458_v10 }
 0x347   : > { %4032 = vmatprep.subr.bf16.mxu0 %v4538_v1 }
 0x348   : > { %4308 = vmatpush3.bf16.msra.mxu1 %v4307_v54  ;;  %v4476_v54 = vld [vmem:[%s5483_s4 + $0x10] sm:$0xff]  }
 0x349   : > { %4309 = vmatprep.subr.bf16.mxu1 %v4540_v28 }
 0x34a   : > { %4033 = vmatpush3.bf16.msra.mxu0 %v4459_v11 }
 0x34b   : > { %4034 = vmatprep.subr.bf16.mxu0 %v4538_v1 }
 0x34c   : > { %4311 = vmatpush3.bf16.msra.mxu1 %v4310_v57  ;;  %v4478_v57 = vld [vmem:[%s5483_s4 + $0x40] sm:$0xff]  }
 0x34d   : > { %4312 = vmatprep.subr.bf16.mxu1 %v4540_v28 }
 0x350   : > { %4314 = vmatpush3.bf16.msra.mxu1 %v4313_v60  ;;  %v4480_v60 = vld [vmem:[%s5483_s4 + $0x50] sm:$0xff]  }
 0x351   : > { %4315 = vmatprep.subr.bf16.mxu1 %v4540_v28 }
 0x354   : > { %4317 = vmatpush3.bf16.msra.mxu1 %v4316_v63 }
 0x355   : > { %4318 = vmatprep.subr.bf16.mxu1 %v4540_v28 }
 0x358   : > { %4320 = vmatpush3.bf16.msra.mxu1 %v4319_v3  ;;  %v4484_v3 = vld [vmem:[%s5483_s4 + $0x30] sm:$0xff]  }
 0x359   : > { %4321 = vmatprep.subr.bf16.mxu1 %v4540_v28 }
 0x35c   : > { %4323 = vmatpush3.bf16.msra.mxu1 %v4322_v6 }
 0x35d   : > { %4324 = vmatprep.subr.bf16.mxu1 %v4540_v28  ;;  %v4460_v28 = vld [vmem:[%s5483_s4 + $0x30] sm:$0xff]  }
 0x35e   : > { %4035 = vmatpush3.bf16.msra.mxu0 %v4460_v28 }
 0x35f   : > { %4036 = vmatprep.subr.bf16.mxu0 %v4538_v1 }
 0x360   : > { %4326 = vmatpush3.bf16.msra.mxu1 %v4325_v9 }
 0x361   : > { %4066 = vmatprep.subr.bf16.mxu1 %v4538_v1 }
 0x362   : > { %4037 = vmatpush3.bf16.msra.mxu0 %v4461_v12 }
 0x363   : > { %4028 = vmatmul.mubr.f32.vlgmr.msra.gmra.mrb[10].mxu1 %v1422_v50  ;;  %4042 = vmatprep.subr.bf16.mxu0 %v4538_v1 }
 0x364   : > { %4074 = vmatprep.mubr.msk.bf16.mxu1 %vm4539_vm0, %v4538_v1  ;;  %4067 = vmatpush3.bf16.msra.mxu1 %v4470_v36 }
 0x365   : > { %4068 = vmatprep.subr.bf16.mxu1 %v4538_v1 }
 0x368   : > { %4069 = vmatpush3.bf16.msra.mxu1 %v4471_v37 }
 0x369   : > { %4070 = vmatprep.subr.bf16.mxu1 %v4538_v1 }
 0x36c   : > { %4071 = vmatpush3.bf16.msra.mxu1 %v4472_v38 }
 0x36d   : > { %4072 = vmatprep.subr.bf16.mxu1 %v4538_v1 }
 0x370   : > { %4073 = vmatpush3.bf16.msra.mxu1 %v4473_v39 }
 0x371   : > { %4078 = vmatprep.subr.bf16.mxu1 %v4538_v1 }
 0x416   : > { %v1505_v13 = vpop.f32.mrb[8].mxu1  ;;  %v1592_v14 = vpop.f32.mrb[10].mxu0 }
 0x417   : > { %v1596_v15 = vmax.f32 %v1505_v13, %v1592_v14  ;;  %v3959_v16 = vpop.f32.mrb[9].mxu1  ;;  %v3994_v17 = vpop.f32.mrb[11].mxu0  ;;  %v4486_v13 = vld [vmem:[%s5483_s4] sm:$0xff]  }
 0x418   : > { %v4488_v16 = vld [vmem:[%s5483_s4 + $0x10] sm:$0xff]   ;;  %v4489_v17 = vld [vmem:[%s5483_s4 + $0x18] sm:$0xff]  }
 0x436   : > { %v1680_v18 = vpop.f32.mrb[10].mxu1 }
 0x437   : > { %v1684_v19 = vmax.f32 %v1596_v15, %v1680_v18  ;;  %v4029_v20 = vpop.f32.mrb[11].mxu1  ;;  %v4487_v15 = vld [vmem:[%s5483_s4 + $0x8] sm:$0xff]  }
 0x439   : > { %1686 = vst.msk [vmem:[#allocation4 + $0x1] sm:$0xff] %vm1685_vm7, %v1684_v19  ;;  %v4490_v19 = vld [vmem:[%s5483_s4 + $0x40] sm:$0xff]  }
 0x440   : > { %v5100_v21 = vld [vmem:[#allocation4 + $0x1] sm:$0xff] }
 0x441   : > { %v1702_v23 = vpack.c.bf16 %v5100_v21, %v5100_v21  ;;  %v1691_v27 = vld [vmem:[#allocation4] sm:$0xff] }
 0x442   : > { %v1692_v30 = vpack.c.bf16 %v1691_v27, %v1691_v27  ;;  %v1846_v34 = vld [vmem:[#allocation4 + $0x2] sm:$0xff]  ;;  %v4494_v27 = vld [vmem:[%s5484_s5 + $0x20] sm:$0xff]  }
 0x443   : > { %4039 = vmatmul.mubr.msk.bf16.vlgmr.msra.gmra.mrb[12].mxu0 %vm1685_vm7, %v1702_v23  ;;  %v1847_v35 = vpack.c.bf16 %v1846_v34, %v1846_v34  ;;  %v4492_v23 = vld [vmem:[%s5483_s4 + $0x50] sm:$0xff]  }
 0x444   : > { %4043 = vmatpush3.bf16.msra.mxu0 %v4462_v22  ;;  %4050 = vmatprep.mubr.msk.bf16.mxu0 %vm4539_vm0, %v4538_v1  ;;  %v4491_v22 = vld [vmem:[%s5483_s4 + $0x48] sm:$0xff]  }
 0x445   : > { %4044 = vmatprep.subr.bf16.mxu0 %v4538_v1 }
 0x448   : > { %4045 = vmatpush3.bf16.msra.mxu0 %v4463_v24  ;;  %v4493_v24 = vld [vmem:[%s5483_s4 + $0x58] sm:$0xff]  }
 0x449   : > { %4046 = vmatprep.subr.bf16.mxu0 %v4538_v1 }
 0x44c   : > { %4047 = vmatpush3.bf16.msra.mxu0 %v4464_v25 }
 0x44d   : > { %4048 = vmatprep.subr.bf16.mxu0 %v4538_v1 }
 0x450   : > { %4049 = vmatpush3.bf16.msra.mxu0 %v4465_v26 }
 0x451   : > { %4054 = vmatprep.subr.bf16.mxu0 %v4538_v1 }
 0x453   : > { %4051 = vmatmul.mubr.msk.bf16.vlgmr.msra.gmra.mrb[12].mxu0 %vm1685_vm7, %v1692_v30  ;;  %v4496_v30 = vld [vmem:[%s5484_s5 + $0x30] sm:$0xff]  }
 0x454   : > { %4055 = vmatpush3.bf16.msra.mxu0 %v4466_v29  ;;  %4062 = vmatprep.mubr.msk.bf16.mxu0 %vm4539_vm0, %v4538_v1  ;;  %v4495_v29 = vld [vmem:[%s5484_s5 + $0x28] sm:$0xff]  }
 0x455   : > { %4056 = vmatprep.subr.bf16.mxu0 %v4538_v1 }
 0x458   : > { %4057 = vmatpush3.bf16.msra.mxu0 %v4467_v31  ;;  %v4497_v31 = vld [vmem:[%s5484_s5 + $0x38] sm:$0xff]  }
 0x459   : > { %4058 = vmatprep.subr.bf16.mxu0 %v4538_v1 }
 0x45c   : > { %4059 = vmatpush3.bf16.msra.mxu0 %v4468_v32 }
 0x45d   : > { %4060 = vmatprep.subr.bf16.mxu0 %v4538_v1 }
 0x460   : > { %4061 = vmatpush3.bf16.msra.mxu0 %v4469_v33 }
 0x461   : > { %4102 = vmatprep.subr.bf16.mxu0 %v4538_v1 }
 0x463   : > { %4063 = vmatmul.mubr.msk.bf16.vlgmr.msra.gmra.mrb[12].mxu0 %vm1685_vm7, %v1847_v35 }
 0x464   : > { %4110 = vmatprep.mubr.msk.bf16.mxu0 %vm4539_vm0, %v4538_v1  ;;  %4103 = vmatpush3.bf16.msra.mxu0 %v4482_v0 }
 0x465   : > { %4104 = vmatprep.subr.bf16.mxu0 %v4538_v1 }
 0x468   : > { %4105 = vmatpush3.bf16.msra.mxu0 %v4483_v2 }
 0x469   : > { %4106 = vmatprep.subr.bf16.mxu0 %v4538_v1 }
 0x46c   : > { %4107 = vmatpush3.bf16.msra.mxu0 %v4484_v3 }
 0x46d   : > { %4108 = vmatprep.subr.bf16.mxu0 %v4538_v1 }
 0x470   : > { %4109 = vmatpush3.bf16.msra.mxu0 %v4485_v4 }
 0x471   : > { %4114 = vmatprep.subr.bf16.mxu0 %v4538_v1 }
 0x536   : > { %v1918_v42 = vpop.f32.mrb[12].mxu0 }
 0x537   : > { %v1929_v43 = vmul.f32 %v5164_v40, %v1918_v42  ;;  %v4064_v44 = vpop.f32.mrb[13].mxu0  ;;  %v4498_v42 = vld [vmem:[%s5484_s5] sm:$0xff]  }
 0x538   : > { %v1921_v45 = vpop.f32.mrb[14].mxu0  ;;  %v4501_v44 = vld [vmem:[%s5484_s5 + $0x18] sm:$0xff]  }
 0x539   : > { %v1934_v46 = vadd.f32 %v5169_v41, %v1929_v43  ;;  %v4065_v47 = vpop.f32.mrb[15].mxu0 }
 0x53b   : > { %v1935_v48 = vmax.f32 %v1934_v46, 0.0  ;;  %v4502_v46 = vld [vmem:[%s5484_s5 + $0x40] sm:$0xff]  }
 0x53d   : > { %v1936_v49 = vadd.f32 %v1935_v48, %v5100_v21  ;;  %v4503_v48 = vld [vmem:[%s5484_s5 + $0x48] sm:$0xff]  }
 0x53f   : > { %1937 = vst.msk [vmem:[#allocation5 + $0x1] sm:$0xff] %vm1685_vm7, %v1936_v49  ;;  %v4504_v49 = vld [vmem:[%s5484_s5 + $0x50] sm:$0xff]  }
 0x546   : > { %v1948_v50 = vld [vmem:[#allocation5 + $0x1] sm:$0xff] }
 0x547   : > { %v1949_v52 = vpack.c.bf16 %v1948_v50, %v1948_v50  ;;  %v1938_v56 = vld [vmem:[#allocation5] sm:$0xff]  ;;  %v4505_v50 = vld [vmem:[%s5484_s5 + $0x58] sm:$0xff]  }
 0x548   : > { %v1939_v58 = vpack.c.bf16 %v1938_v56, %v1938_v56  ;;  %v2092_v62 = vld [vmem:[#allocation5 + $0x2] sm:$0xff]  ;;  %v4509_v56 = vld [vmem:[%s5484_s5 + $0x38] sm:$0xff]  }
 0x549   : > { %4075 = vmatmul.mubr.msk.bf16.vlgmr.msra.gmra.mrb[12].mxu1 %vm1685_vm7, %v1949_v52  ;;  %v2093_v63 = vpack.c.bf16 %v2092_v62, %v2092_v62 }
 0x54a   : > { %4079 = vmatpush3.bf16.msra.mxu1 %v4474_v51  ;;  %4086 = vmatprep.mubr.msk.bf16.mxu1 %vm4539_vm0, %v4538_v1 }
 0x54b   : > { %4080 = vmatprep.subr.bf16.mxu1 %v4538_v1 }
 0x54e   : > { %4081 = vmatpush3.bf16.msra.mxu1 %v4475_v53  ;;  %v4506_v53 = vld [vmem:[%s5484_s5 + $0x20] sm:$0xff]  }
 0x54f   : > { %4082 = vmatprep.subr.bf16.mxu1 %v4538_v1 }
 0x552   : > { %4083 = vmatpush3.bf16.msra.mxu1 %v4476_v54  ;;  %v4507_v54 = vld [vmem:[%s5484_s5 + $0x28] sm:$0xff]  }
 0x553   : > { %4084 = vmatprep.subr.bf16.mxu1 %v4538_v1 }
 0x556   : > { %4085 = vmatpush3.bf16.msra.mxu1 %v4477_v55  ;;  %v4508_v55 = vld [vmem:[%s5484_s5 + $0x30] sm:$0xff]  }
 0x557   : > { %4090 = vmatprep.subr.bf16.mxu1 %v4538_v1 }
 0x559   : > { %4087 = vmatmul.mubr.msk.bf16.vlgmr.msra.gmra.mrb[12].mxu1 %vm1685_vm7, %v1939_v58  ;;  %v5365_v58 = vld [vmem:[%s5488_s9 + $0x4] ss:$0 sm:$0xff] }
 0x55a   : > { %4091 = vmatpush3.bf16.msra.mxu1 %v4478_v57  ;;  %4098 = vmatprep.mubr.msk.bf16.mxu1 %vm4539_vm0, %v4538_v1  ;;  %v5360_v57 = vld [vmem:[%s5487_s8 + $0x4] ss:$0 sm:$0xff] }
 0x55b   : > { %4092 = vmatprep.subr.bf16.mxu1 %v4538_v1 }
 0x55e   : > { %4093 = vmatpush3.bf16.msra.mxu1 %v4479_v59 }
 0x55f   : > { %4094 = vmatprep.subr.bf16.mxu1 %v4538_v1 }
 0x562   : > { %4095 = vmatpush3.bf16.msra.mxu1 %v4480_v60 }
 0x563   : > { %4096 = vmatprep.subr.bf16.mxu1 %v4538_v1 }
 0x566   : > { %4097 = vmatpush3.bf16.msra.mxu1 %v4481_v61 }
 0x567   : > { %4138 = vmatprep.subr.bf16.mxu1 %v4538_v1 }
 0x569   : > { %4099 = vmatmul.mubr.msk.bf16.vlgmr.msra.gmra.mrb[12].mxu1 %vm1685_vm7, %v2093_v63 }
 0x56a   : > { %4146 = vmatprep.mubr.msk.bf16.mxu1 %vm4539_vm0, %v4538_v1  ;;  %4139 = vmatpush3.bf16.msra.mxu1 %v4494_v27 }
 0x56b   : > { %4140 = vmatprep.subr.bf16.mxu1 %v4538_v1 }
 0x56e   : > { %4141 = vmatpush3.bf16.msra.mxu1 %v4495_v29 }
 0x56f   : > { %4142 = vmatprep.subr.bf16.mxu1 %v4538_v1 }
 0x572   : > { %4143 = vmatpush3.bf16.msra.mxu1 %v4496_v30 }
 0x573   : > { %4144 = vmatprep.subr.bf16.mxu1 %v4538_v1 }
 0x576   : > { %4145 = vmatpush3.bf16.msra.mxu1 %v4497_v31 }
 0x577   : > { %4150 = vmatprep.subr.bf16.mxu1 %v4538_v1 }
 0x63c   : > { %v2163_v5 = vpop.f32.mrb[12].mxu1 }
 0x63d   : > { %v2170_v6 = vmul.f32 %v5164_v40, %v2163_v5  ;;  %v4100_v7 = vpop.f32.mrb[13].mxu1  ;;  %v4510_v5 = vld [vmem:[%s5484_s5] sm:$0xff]  }
 0x63e   : > { %v2166_v8 = vpop.f32.mrb[14].mxu1  ;;  %v4511_v7 = vld [vmem:[%s5484_s5 + $0x8] sm:$0xff]  }
 0x63f   : > { %v2171_v9 = vadd.f32 %v5169_v41, %v2170_v6  ;;  %v4101_v10 = vpop.f32.mrb[15].mxu1  ;;  %v4512_v8 = vld [vmem:[%s5484_s5 + $0x10] sm:$0xff]  }
 0x641   : > { %v2172_v11 = vmax.f32 %v2171_v9, 0.0  ;;  %v4513_v9 = vld [vmem:[%s5484_s5 + $0x18] sm:$0xff]  }
 0x643   : > { %v2174_v28 = vadd.f32 %v2172_v11, %v5100_v21  ;;  %v4514_v11 = vld [vmem:[%s5484_s5 + $0x40] sm:$0xff]  }
 0x645   : > { %2175 = vst.msk [vmem:[#allocation5 + $0x1] sm:$0xff] %vm1685_vm7, %v2174_v28 }
 0x64c   : > { %v2186_v12 = vld [vmem:[#allocation5 + $0x1] sm:$0xff] }
 0x64d   : > { %v2187_v14 = vpack.c.bf16 %v2186_v12, %v2186_v12  ;;  %v2176_v18 = vld [vmem:[#allocation5] sm:$0xff]  ;;  %v4515_v12 = vld [vmem:[%s5484_s5 + $0x48] sm:$0xff]  }
 0x64e   : > { %v2177_v20 = vpack.c.bf16 %v2176_v18, %v2176_v18  ;;  %v2330_v25 = vld [vmem:[#allocation5 + $0x2] sm:$0xff] }
 0x64f   : > { %4111 = vmatmul.mubr.msk.bf16.vlgmr.msra.gmra.mrb[16].mxu0 %vm1685_vm7, %v2187_v14  ;;  %v2331_v26 = vpack.c.bf16 %v2330_v25, %v2330_v25  ;;  %v4517_v14 = vld [vmem:[%s5484_s5 + $0x58] sm:$0xff]   ;;  %v4519_v18 = vld [vmem:[%s5484_s5 + $0x28] sm:$0xff]  }
 0x650   : > { %4115 = vmatpush3.bf16.msra.mxu0 %v4486_v13  ;;  %4122 = vmatprep.mubr.msk.bf16.mxu0 %vm4539_vm0, %v4538_v1  ;;  %v4516_v13 = vld [vmem:[%s5484_s5 + $0x50] sm:$0xff]  }
 0x651   : > { %4116 = vmatprep.subr.bf16.mxu0 %v4538_v1 }
 0x654   : > { %4117 = vmatpush3.bf16.msra.mxu0 %v4487_v15 }
 0x655   : > { %4118 = vmatprep.subr.bf16.mxu0 %v4538_v1 }
 0x658   : > { %4119 = vmatpush3.bf16.msra.mxu0 %v4488_v16 }
 0x659   : > { %4120 = vmatprep.subr.bf16.mxu0 %v4538_v1 }
 0x65c   : > { %4121 = vmatpush3.bf16.msra.mxu0 %v4489_v17  ;;  %v4518_v17 = vld [vmem:[%s5484_s5 + $0x20] sm:$0xff]  }
 0x65d   : > { %4126 = vmatprep.subr.bf16.mxu0 %v4538_v1 }
 0x65f   : > { %4123 = vmatmul.mubr.msk.bf16.vlgmr.msra.gmra.mrb[16].mxu0 %vm1685_vm7, %v2177_v20  ;;  %v4521_v20 = vld [vmem:[%s5484_s5 + $0x38] sm:$0xff]  }
 0x660   : > { %4127 = vmatpush3.bf16.msra.mxu0 %v4490_v19  ;;  %4134 = vmatprep.mubr.msk.bf16.mxu0 %vm4539_vm0, %v4538_v1  ;;  %v4520_v19 = vld [vmem:[%s5484_s5 + $0x30] sm:$0xff]  }
 0x661   : > { %4128 = vmatprep.subr.bf16.mxu0 %v4538_v1 }
 0x664   : > { %4129 = vmatpush3.bf16.msra.mxu0 %v4491_v22 }
 0x665   : > { %4130 = vmatprep.subr.bf16.mxu0 %v4538_v1 }
 0x668   : > { %4131 = vmatpush3.bf16.msra.mxu0 %v4492_v23 }
 0x669   : > { %4132 = vmatprep.subr.bf16.mxu0 %v4538_v1 }
 0x66c   : > { %4133 = vmatpush3.bf16.msra.mxu0 %v4493_v24 }
 0x66d   : > { %4174 = vmatprep.subr.bf16.mxu0 %v4538_v1 }
 0x66f   : > { %4135 = vmatmul.mubr.msk.bf16.vlgmr.msra.gmra.mrb[16].mxu0 %vm1685_vm7, %v2331_v26 }
 0x670   : > { %4182 = vmatprep.mubr.msk.bf16.mxu0 %vm4539_vm0, %v4538_v1  ;;  %4175 = vmatpush3.bf16.msra.mxu0 %v4506_v53 }
 0x671   : > { %4176 = vmatprep.subr.bf16.mxu0 %v4538_v1 }
 0x674   : > { %4177 = vmatpush3.bf16.msra.mxu0 %v4507_v54 }
 0x675   : > { %4178 = vmatprep.subr.bf16.mxu0 %v4538_v1 }
 0x678   : > { %4179 = vmatpush3.bf16.msra.mxu0 %v4508_v55 }
 0x679   : > { %4180 = vmatprep.subr.bf16.mxu0 %v4538_v1 }
 0x67c   : > { %4181 = vmatpush3.bf16.msra.mxu0 %v4509_v56 }
 0x67d   : > { %4186 = vmatprep.subr.bf16.mxu0 %v4538_v1 }
 0x742   : > { %v2401_v32 = vpop.f32.mrb[16].mxu0 }
 0x743   : > { %v2408_v33 = vmul.f32 %v5164_v40, %v2401_v32  ;;  %v4136_v34 = vpop.f32.mrb[17].mxu0  ;;  %v4499_v40 = vld [vmem:[%s5484_s5 + $0x8] sm:$0xff]   ;;  %v4522_v32 = vld [vmem:[%s5484_s5] sm:$0xff]  }
 0x744   : > { %v2404_v35 = vpop.f32.mrb[18].mxu0  ;;  %v4523_v34 = vld [vmem:[%s5484_s5 + $0x8] sm:$0xff]  }
 0x745   : > { %v2409_v36 = vadd.f32 %v5169_v41, %v2408_v33  ;;  %v4137_v37 = vpop.f32.mrb[19].mxu0  ;;  %v4500_v41 = vld [vmem:[%s5484_s5 + $0x10] sm:$0xff]  }
 0x746   : > { %v4524_v35 = vld [vmem:[%s5484_s5 + $0x10] sm:$0xff]  }
 0x747   : > { %v2410_v38 = vmax.f32 %v2409_v36, 0.0  ;;  %v4525_v36 = vld [vmem:[%s5484_s5 + $0x18] sm:$0xff]  }
 0x749   : > { %2411 = vst.msk [vmem:[#allocation6 + $0x1] sm:$0xff] %vm1685_vm7, %v2410_v38  ;;  %v4526_v38 = vld [vmem:[%s5484_s5 + $0x40] sm:$0xff]  }
 0x750   : > { %v5296_v39 = vld [vmem:[#allocation6 + $0x1] sm:$0xff] }
 0x751   : > { %v2423_v43 = vpack.c.bf16 %v5296_v39, %v5296_v39  ;;  %v2412_v45 = vld [vmem:[#allocation6] sm:$0xff] }
 0x752   : > { %v2413_v47 = vpack.c.bf16 %v2412_v45, %v2412_v45  ;;  %v2567_v51 = vld [vmem:[#allocation6 + $0x2] sm:$0xff] }
 0x753   : > { %4147 = vmatmul.mubr.msk.bf16.vlgmr.msra.gmra.mrb[16].mxu1 %vm1685_vm7, %v2423_v43  ;;  %v2568_v52 = vpack.c.bf16 %v2567_v51, %v2567_v51  ;;  %v4528_v43 = vld [vmem:[%s5484_s5 + $0x50] sm:$0xff]  }
 0x754   : > { %4151 = vmatpush3.bf16.msra.mxu1 %v4498_v42  ;;  %4158 = vmatprep.mubr.msk.bf16.mxu1 %vm4539_vm0, %v4538_v1  ;;  %v4527_v42 = vld [vmem:[%s5484_s5 + $0x48] sm:$0xff]  }
 0x755   : > { %4152 = vmatprep.subr.bf16.mxu1 %v4538_v1 }
 0x758   : > { %4153 = vmatpush3.bf16.msra.mxu1 %v4499_v40  ;;  %v4529_v40 = vld [vmem:[%s5484_s5 + $0x58] sm:$0xff]  }
 0x759   : > { %4154 = vmatprep.subr.bf16.mxu1 %v4538_v1 }
 0x75c   : > { %4155 = vmatpush3.bf16.msra.mxu1 %v4500_v41 }
 0x75d   : > { %4156 = vmatprep.subr.bf16.mxu1 %v4538_v1 }
 0x760   : > { %4157 = vmatpush3.bf16.msra.mxu1 %v4501_v44 }
 0x761   : > { %4162 = vmatprep.subr.bf16.mxu1 %v4538_v1 }
 0x763   : > { %4159 = vmatmul.mubr.msk.bf16.vlgmr.msra.gmra.mrb[16].mxu1 %vm1685_vm7, %v2413_v47 }
 0x764   : > { %4163 = vmatpush3.bf16.msra.mxu1 %v4502_v46  ;;  %4170 = vmatprep.mubr.msk.bf16.mxu1 %vm4539_vm0, %v4538_v1 }
 0x765   : > { %4164 = vmatprep.subr.bf16.mxu1 %v4538_v1 }
 0x768   : > { %4165 = vmatpush3.bf16.msra.mxu1 %v4503_v48 }
 0x769   : > { %4166 = vmatprep.subr.bf16.mxu1 %v4538_v1 }
 0x76c   : > { %4167 = vmatpush3.bf16.msra.mxu1 %v4504_v49 }
 0x76d   : > { %4168 = vmatprep.subr.bf16.mxu1 %v4538_v1 }
 0x770   : > { %4169 = vmatpush3.bf16.msra.mxu1 %v4505_v50 }
 0x771   : > { %4210 = vmatprep.subr.bf16.mxu1 %v4538_v1 }
 0x773   : > { %4171 = vmatmul.mubr.msk.bf16.vlgmr.msra.gmra.mrb[16].mxu1 %vm1685_vm7, %v2568_v52 }
 0x774   : > { %4218 = vmatprep.mubr.msk.bf16.mxu1 %vm4539_vm0, %v4538_v1  ;;  %4211 = vmatpush3.bf16.msra.mxu1 %v4518_v17 }
 0x775   : > { %4212 = vmatprep.subr.bf16.mxu1 %v4538_v1 }
 0x778   : > { %4213 = vmatpush3.bf16.msra.mxu1 %v4519_v18 }
 0x779   : > { %4214 = vmatprep.subr.bf16.mxu1 %v4538_v1 }
 0x77c   : > { %4215 = vmatpush3.bf16.msra.mxu1 %v4520_v19 }
 0x77d   : > { %4216 = vmatprep.subr.bf16.mxu1 %v4538_v1 }
 0x780   : > { %4217 = vmatpush3.bf16.msra.mxu1 %v4521_v20 }
 0x781   : > { %4222 = vmatprep.subr.bf16.mxu1 %v4538_v1 }
 0x846   : > { %v2639_v59 = vpop.f32.mrb[16].mxu1 }
 0x847   : > { %v2650_v60 = vmul.f32 %v5360_v57, %v2639_v59  ;;  %v4172_v61 = vpop.f32.mrb[17].mxu1 }
 0x848   : > { %v2642_v62 = vpop.f32.mrb[18].mxu1 }
 0x849   : > { %v2655_v63 = vadd.f32 %v5365_v58, %v2650_v60  ;;  %v4173_v0 = vpop.f32.mrb[19].mxu1 }
 0x84b   : > { %v2656_v2 = vmax.f32 %v2655_v63, 0.0 }
 0x84d   : > { %v2657_v3 = vadd.f32 %v2656_v2, %v5296_v39 }
 0x84f   : > { %2658 = vst.msk [vmem:[#allocation5 + $0x1] sm:$0xff] %vm1685_vm7, %v2657_v3 }
 0x856   : > { %v2669_v4 = vld [vmem:[#allocation5 + $0x1] sm:$0xff] }
 0x857   : > { %v2670_v6 = vpack.c.bf16 %v2669_v4, %v2669_v4  ;;  %v2659_v10 = vld [vmem:[#allocation5] sm:$0xff] }
 0x858   : > { %v2660_v28 = vpack.c.bf16 %v2659_v10, %v2659_v10  ;;  %v2813_v15 = vld [vmem:[#allocation5 + $0x2] sm:$0xff] }
 0x859   : > { %4183 = vmatmul.mubr.msk.bf16.vlgmr.msra.gmra.mrb[20].mxu0 %vm1685_vm7, %v2670_v6  ;;  %v2814_v16 = vpack.c.bf16 %v2813_v15, %v2813_v15 }
 0x85a   : > { %4187 = vmatpush3.bf16.msra.mxu0 %v4510_v5  ;;  %4194 = vmatprep.mubr.msk.bf16.mxu0 %vm4539_vm0, %v4538_v1 }
 0x85b   : > { %4188 = vmatprep.subr.bf16.mxu0 %v4538_v1 }
 0x85e   : > { %4189 = vmatpush3.bf16.msra.mxu0 %v4511_v7 }
 0x85f   : > { %4190 = vmatprep.subr.bf16.mxu0 %v4538_v1 }
 0x862   : > { %4191 = vmatpush3.bf16.msra.mxu0 %v4512_v8 }
 0x863   : > { %4192 = vmatprep.subr.bf16.mxu0 %v4538_v1 }
 0x866   : > { %4193 = vmatpush3.bf16.msra.mxu0 %v4513_v9 }
 0x867   : > { %4198 = vmatprep.subr.bf16.mxu0 %v4538_v1 }
 0x869   : > { %4195 = vmatmul.mubr.msk.bf16.vlgmr.msra.gmra.mrb[20].mxu0 %vm1685_vm7, %v2660_v28 }
 0x86a   : > { %4199 = vmatpush3.bf16.msra.mxu0 %v4514_v11  ;;  %4206 = vmatprep.mubr.msk.bf16.mxu0 %vm4539_vm0, %v4538_v1 }
 0x86b   : > { %4200 = vmatprep.subr.bf16.mxu0 %v4538_v1 }
 0x86e   : > { %4201 = vmatpush3.bf16.msra.mxu0 %v4515_v12 }
 0x86f   : > { %4202 = vmatprep.subr.bf16.mxu0 %v4538_v1 }
 0x872   : > { %4203 = vmatpush3.bf16.msra.mxu0 %v4516_v13 }
 0x873   : > { %4204 = vmatprep.subr.bf16.mxu0 %v4538_v1 }
 0x876   : > { %4205 = vmatpush3.bf16.msra.mxu0 %v4517_v14 }
 0x879   : > { %4207 = vmatmul.mubr.msk.bf16.vlgmr.msra.gmra.mrb[20].mxu0 %vm1685_vm7, %v2814_v16 }
 0x94c   : > { %v2884_v22 = vpop.f32.mrb[20].mxu0 }
 0x94d   : > { %v2891_v23 = vmul.f32 %v5360_v57, %v2884_v22  ;;  %v4208_v24 = vpop.f32.mrb[21].mxu0 }
 0x94e   : > { %v2887_v25 = vpop.f32.mrb[22].mxu0 }
 0x94f   : > { %v2892_v26 = vadd.f32 %v5365_v58, %v2891_v23  ;;  %v4209_v27 = vpop.f32.mrb[23].mxu0 }
 0x951   : > { %v2893_v29 = vmax.f32 %v2892_v26, 0.0 }
 0x953   : > { %v2895_v30 = vadd.f32 %v2893_v29, %v5296_v39 }
 0x955   : > { %2896 = vst.msk [vmem:[#allocation5 + $0x1] sm:$0xff] %vm1685_vm7, %v2895_v30 }
 0x95c   : > { %v2907_v31 = vld [vmem:[#allocation5 + $0x1] sm:$0xff] }
 0x95d   : > { %v2908_v33 = vpack.c.bf16 %v2907_v31, %v2907_v31  ;;  %v2897_v37 = vld [vmem:[#allocation5] sm:$0xff] }
 0x95e   : > { %v2898_v39 = vpack.c.bf16 %v2897_v37, %v2897_v37  ;;  %v3051_v41 = vld [vmem:[#allocation5 + $0x2] sm:$0xff] }
 0x95f   : > { %4219 = vmatmul.mubr.msk.bf16.vlgmr.msra.gmra.mrb[20].mxu1 %vm1685_vm7, %v2908_v33  ;;  %v3052_v44 = vpack.c.bf16 %v3051_v41, %v3051_v41 }
 0x960   : > { %4223 = vmatpush3.bf16.msra.mxu1 %v4522_v32  ;;  %4230 = vmatprep.mubr.msk.bf16.mxu1 %vm4539_vm0, %v4538_v1 }
 0x961   : > { %4224 = vmatprep.subr.bf16.mxu1 %v4538_v1 }
 0x964   : > { %4225 = vmatpush3.bf16.msra.mxu1 %v4523_v34 }
 0x965   : > { %4226 = vmatprep.subr.bf16.mxu1 %v4538_v1 }
 0x968   : > { %4227 = vmatpush3.bf16.msra.mxu1 %v4524_v35 }
 0x969   : > { %4228 = vmatprep.subr.bf16.mxu1 %v4538_v1 }
 0x96c   : > { %4229 = vmatpush3.bf16.msra.mxu1 %v4525_v36 }
 0x96d   : > { %4234 = vmatprep.subr.bf16.mxu1 %v4538_v1 }
 0x96f   : > { %4231 = vmatmul.mubr.msk.bf16.vlgmr.msra.gmra.mrb[20].mxu1 %vm1685_vm7, %v2898_v39 }
 0x970   : > { %4235 = vmatpush3.bf16.msra.mxu1 %v4526_v38  ;;  %4242 = vmatprep.mubr.msk.bf16.mxu1 %vm4539_vm0, %v4538_v1 }
 0x971   : > { %4236 = vmatprep.subr.bf16.mxu1 %v4538_v1 }
 0x974   : > { %4237 = vmatpush3.bf16.msra.mxu1 %v4527_v42 }
 0x975   : > { %4238 = vmatprep.subr.bf16.mxu1 %v4538_v1 }
 0x978   : > { %4239 = vmatpush3.bf16.msra.mxu1 %v4528_v43 }
 0x979   : > { %4240 = vmatprep.subr.bf16.mxu1 %v4538_v1 }
 0x97c   : > { %4241 = vmatpush3.bf16.msra.mxu1 %v4529_v40 }
 0x97f   : > { %4243 = vmatmul.mubr.msk.bf16.vlgmr.msra.gmra.mrb[20].mxu1 %vm1685_vm7, %v3052_v44 }
 0xa52   : > { %v3122_v45 = vpop.f32.mrb[20].mxu1 }
 0xa53   : > { %v3129_v46 = vmul.f32 %v5360_v57, %v3122_v45  ;;  %v4244_v47 = vpop.f32.mrb[21].mxu1 }
 0xa54   : > { %v3125_v48 = vpop.f32.mrb[22].mxu1 }
 0xa55   : > { %v3130_v49 = vadd.f32 %v5365_v58, %v3129_v46  ;;  %v4245_v50 = vpop.f32.mrb[23].mxu1 }
 0xa57   : > { %v3131_v51 = vmax.f32 %v3130_v49, 0.0 }
 0xa59   : > { %v3133_v1 = vadd.f32 %v3131_v51, %v5100_v21 }
 0xa5b   : > { %3134 = vst.msk [vmem:[%s359_s23] sm:$0xff] %vm1685_vm7, %v3133_v1 }
 0xa5c PF: > { %s20_s13 = sadd.s32 1, %s4536_s13  }
 0xa5d   : > { %p17_p5 = scmp.ge.s32.totalorder %s20_s13, 4  }
 0xa5f   :  { %19 = sbr.rel (!%p17_p5) target bundleno = 1 (0x1), region = 102 }

</bundles_post_ra>
